<compile_context>
chip_gen: v6e
topology: v6e:2x2x1
jax: 0.10.0
libtpu: 0.0.40
codegen_flags: <defaults>
</compile_context>

<pallas_src>
import jax
import jax.numpy as jnp
from jax.experimental import pallas as pl
from jax.experimental.pallas import tpu as pltpu

EPS = 1e-5
F32 = jnp.float32


# ----------------------------- Pallas kernel -------------------------------

def _biasfree_ln_kernel(x_ref, w_ref, o_ref):
    # x_ref: (TM, C), w_ref: (1, C), o_ref: (TM, C)
    x = x_ref[...].astype(F32)
    mu = jnp.mean(x, axis=-1, keepdims=True)
    ex2 = jnp.mean(x * x, axis=-1, keepdims=True)
    # One-pass biased variance about the mean; clamp guards catastrophic-cancellation
    # negatives (f32 accumulation keeps this accurate for activation-scale inputs).
    var = jnp.maximum(ex2 - mu * mu, 0.0)
    inv = jax.lax.rsqrt(var + EPS)                       # EUP rsqrt, off the VALU path
    # Bias-free: x (NOT x - mu) is scaled, and there is no beta term.
    o_ref[...] = (x * inv * w_ref[...].astype(F32)).astype(o_ref.dtype)


# ------------------------------ tiling policy -------------------------------

def _pick_row_tile(m, c, itemsize, target_block_bytes, align=16):
    """Budget-driven TM: multi-MiB blocks amortize the ~0.35 us per-grid-step cost.

    align=16 keeps TM valid for both f32 (8-sublane) and bf16 (16-sublane packing).
    """
    tm = (target_block_bytes // max(1, c * itemsize)) // align * align
    tm = max(align, tm)
    if tm >= m:
        return m                        # whole slab in one block (full-extent dim is legal)
    steps = -(-m // tm)                 # cdiv
    if steps % 2:                       # prefer an even step count (v7x megacore balance)
        steps += 1
        tm = -(-m // steps)             # rows per step
        tm = -(-tm // align) * align    # round up to alignment
        if tm >= m:
            return m
    return tm


# ------------------------------- wrapper ------------------------------------

def biasfree_layernorm(x, weight, *, target_block_bytes=4 << 20):
    """x: (..., C); weight: (C,). Returns array with x.shape / x.dtype."""
    orig_shape = x.shape
    c = orig_shape[-1]
    m = 1
    for d in orig_shape[:-1]:
        m *= d
    x2 = x.reshape(m, c)                # contiguous reshape: metadata only
    w2 = weight.reshape(1, c)

    itemsize = jnp.dtype(x.dtype).itemsize
    tm = _pick_row_tile(m, c, itemsize, target_block_bytes)
    grid = (pl.cdiv(m, tm),)

    cost = pl.CostEstimate(
        flops=int(5 * m * c),
        transcendentals=int(m),
        bytes_accessed=int(2 * m * c * itemsize + c * jnp.dtype(weight.dtype).itemsize),
    )

    out = pl.pallas_call(
        _biasfree_ln_kernel,
        out_shape=jax.ShapeDtypeStruct((m, c), x.dtype),
        grid=grid,
        in_specs=[
            pl.BlockSpec((tm, c), lambda i: (i, 0)),
            pl.BlockSpec((1, c), lambda i: (0, 0)),
        ],
        out_specs=pl.BlockSpec((tm, c), lambda i: (i, 0)),
        compiler_params=pltpu.CompilerParams(
            dimension_semantics=("parallel",),
            vmem_limit_bytes=32 * 1024 * 1024,   # explicit: safe on v5e/v6e/v7x for ~4 MiB blocks
        ),
        cost_estimate=cost,
    )(x2, w2)
    return out.reshape(orig_shape)


# --------------------------------- demo ------------------------------------

def _ref(x, w):
    xf = x.astype(F32)
    mu = jnp.mean(xf, axis=-1, keepdims=True)
    var = jnp.mean(jnp.square(xf - mu), axis=-1, keepdims=True)
    return (xf / jnp.sqrt(var + EPS) * w.astype(F32)).astype(x.dtype)


if __name__ == "__main__":
    key = jax.random.PRNGKey(0)
    k1, k2, k3, kw = jax.random.split(key, 4)

    ln = jax.jit(biasfree_layernorm, static_argnames=("target_block_bytes",))

    # Case 1: lane-dense C=128, fits a single budgeted block.
    B, L, C = 2, 256, 128
    x1 = jax.random.normal(k1, (B, L, C), F32)
    w1 = (1.0 + 0.1 * jax.random.normal(kw, (C,), F32)).astype(F32)
    o1 = jax.block_until_ready(ln(x1, w1))
    assert o1.shape == x1.shape
    assert bool(jnp.all(jnp.isfinite(o1)))
    assert bool(jnp.allclose(o1, _ref(x1, w1), atol=1e-4, rtol=1e-5))

    # Case 2: realistic DAST channel width (C=48, lane-sparse stores handled by Pallas),
    # small forced tile budget -> multi-step cdiv grid with a partial last row-tile.
    x2 = jax.random.normal(k2, (2, 250, 48), F32)
    w2 = (1.0 + 0.05 * jax.random.normal(kw, (48,), F32)).astype(F32)
    o2 = jax.block_until_ready(ln(x2, w2, target_block_bytes=64 * 48 * 4))
    assert o2.shape == x2.shape
    assert bool(jnp.all(jnp.isfinite(o2)))
    assert bool(jnp.allclose(o2, _ref(x2, w2), atol=1e-4, rtol=1e-5))

    # Case 3: bf16 I/O (halves HBM traffic); stats still accumulate in f32 in-kernel.
    x3 = jax.random.normal(k3, (2, 128, 96), F32).astype(jnp.bfloat16)
    w3 = (1.0 + 0.05 * jax.random.normal(kw, (96,), F32)).astype(F32)
    o3 = jax.block_until_ready(ln(x3, w3))
    assert o3.shape == x3.shape and o3.dtype == jnp.bfloat16
    assert bool(jnp.all(jnp.isfinite(o3.astype(F32))))
    assert bool(jnp.allclose(o3.astype(F32), _ref(x3, w3).astype(F32), atol=3e-2, rtol=3e-2))

    print("KERNEL_OK")
</pallas_src>

<mosaic_0001>
module attributes {stable_mosaic.version = 11 : i64} {
  func.func @_biasfree_ln_kernel(%arg0: i32, %arg1: memref<512x128xf32, #tpu.memory_space<vmem>>, %arg2: memref<1x128xf32, #tpu.memory_space<vmem>>, %arg3: memref<512x128xf32, #tpu.memory_space<vmem>>) attributes {dimension_semantics = [#tpu.dimension_semantics<parallel>], iteration_bounds = array<i64: 1>, scalar_prefetch = 0 : i64, scratch_operands = 0 : i64, tpu.core_type = #tpu.core_type<tc>, window_params = [{transform_indices = @transform_0, window_bounds = array<i64: 512, 128>}, {pipeline_mode = #tpu.pipeline_mode<synchronous>, transform_indices = @transform_1, window_bounds = array<i64: 1, 128>}, {transform_indices = @transform_2, window_bounds = array<i64: 512, 128>}]} {
    %c0 = arith.constant 0 : index
    %c0_0 = arith.constant 0 : index
    %0 = vector.load %arg1[%c0, %c0_0] : memref<512x128xf32, #tpu.memory_space<vmem>>, vector<512x128xf32>
    %cst = arith.constant dense<0.000000e+00> : vector<512xf32>
    %1 = vector.multi_reduction <add>, %0, %cst [1] : vector<512x128xf32> to vector<512xf32>
    %2 = vector.shape_cast %1 : vector<512xf32> to vector<512x1xf32>
    %cst_1 = arith.constant 1.280000e+02 : f32
    %3 = vector.broadcast %cst_1 : f32 to vector<512x1xf32>
    %4 = arith.divf %2, %3 : vector<512x1xf32>
    %5 = arith.mulf %0, %0 : vector<512x128xf32>
    %cst_2 = arith.constant dense<0.000000e+00> : vector<512xf32>
    %6 = vector.multi_reduction <add>, %5, %cst_2 [1] : vector<512x128xf32> to vector<512xf32>
    %7 = vector.shape_cast %6 : vector<512xf32> to vector<512x1xf32>
    %cst_3 = arith.constant 1.280000e+02 : f32
    %8 = vector.broadcast %cst_3 : f32 to vector<512x1xf32>
    %9 = arith.divf %7, %8 : vector<512x1xf32>
    %10 = arith.mulf %4, %4 : vector<512x1xf32>
    %11 = arith.subf %9, %10 : vector<512x1xf32>
    %cst_4 = arith.constant 0.000000e+00 : f32
    %12 = vector.broadcast %cst_4 : f32 to vector<512x1xf32>
    %13 = arith.maximumf %11, %12 : vector<512x1xf32>
    %cst_5 = arith.constant 9.99999974E-6 : f32
    %14 = vector.broadcast %cst_5 : f32 to vector<512x1xf32>
    %15 = arith.addf %13, %14 : vector<512x1xf32>
    %16 = math.rsqrt %15 : vector<512x1xf32>
    %17 = vector.broadcast %16 : vector<512x1xf32> to vector<512x128xf32>
    %18 = arith.mulf %0, %17 : vector<512x128xf32>
    %c0_6 = arith.constant 0 : index
    %c0_7 = arith.constant 0 : index
    %19 = vector.load %arg2[%c0_6, %c0_7] : memref<1x128xf32, #tpu.memory_space<vmem>>, vector<1x128xf32>
    %20 = vector.broadcast %19 : vector<1x128xf32> to vector<512x128xf32>
    %21 = arith.mulf %18, %20 : vector<512x128xf32>
    %c0_8 = arith.constant 0 : index
    %c0_9 = arith.constant 0 : index
    %22 = vector.load %arg3[%c0_8, %c0_9] : memref<512x128xf32, #tpu.memory_space<vmem>>, vector<512x128xf32>
    tpu.vector_store %arg3[%c0_8, %c0_9], %21 {strides = array<i32>} : memref<512x128xf32, #tpu.memory_space<vmem>>, vector<512x128xf32>,
    return
  }
  func.func @transform_0(%arg0: i32) -> (i32, i32) {
    %c0_i32 = arith.constant 0 : i32
    %c0_i32_0 = arith.constant 0 : i32
    return %arg0, %c0_i32 : i32, i32
  }
  func.func @transform_1(%arg0: i32) -> (i32, i32) {
    %c0_i32 = arith.constant 0 : i32
    %c0_i32_0 = arith.constant 0 : i32
    %c0_i32_1 = arith.constant 0 : i32
    return %c0_i32, %c0_i32_0 : i32, i32
  }
  func.func @transform_2(%arg0: i32) -> (i32, i32) {
    %c0_i32 = arith.constant 0 : i32
    %c0_i32_0 = arith.constant 0 : i32
    return %arg0, %c0_i32 : i32, i32
  }
}

</mosaic_0001>

<bundles_post_ra>
// kernel: biasfree_layernorm.1
= control target key start
LH: loop header
LB: loop body
LE: loop exit
PB: predicated region body
PF: predicated region fallthrough
CT: control target
= control target key end

     0   :  { %7 = vsyncpa [#allocation3], 0  ;;  %s2108_s0 = inlined_call_operand.hbm [shape: f32[512,128], index: 0, kind: input, shape index: {}]   ;;  %s2109_s1 = inlined_call_operand.vmem [shape: f32[1,128], index: 1, kind: input, shape index: {}]   ;;  %s2110_s2 = inlined_call_operand.hbm [shape: f32[512,128], index: 2, kind: output, shape index: {}]  }
   0x1   :  { %8 = vsyncpa [#allocation4], 0  ;;  %s1311_s9 = smov [#allocation2]  }
   0x2   :  { %s14_s10 = sshll.u32 %s1311_s9, 4  ;;  %s15_s10 = int_to_ptr.vmem [resolvable:$true] %s14_s10 }
   0x3   :  { %s1275_s11 = scalar_lea.vmem %s15_s10, 8192  ;;  %p1280_p1 = scmp.lt.s32.totalorder %s15_s10, %s15_s10 }
   0x4   :  { %p1276_p0 = scmp.ne.s32.totalorder %s15_s10, %s1275_s11  ;;  %p1281_p2 = scmp.lt.s32.totalorder %s1275_s11, %s1275_s11 }
   0x6   :  { %p1282_p3 = por %p1281_p2, %p1280_p1 }
   0x8   :  { %p1283_p4 = pnand %p1282_p3, %p1276_p0 }
   0xa   :  { %1286 = shalt.err (!%p1283_p4)
}
   0xb   :  { %s1312_s12 = smov 128   ;;  %s1313_s13 = smov 8  }
   0xc   :  { %20 = dma.hbm_to_vmem [thread:$0]  %s2108_s0, 8192, %s15_s10, [#allocation3], %s1312_s12, %s1312_s12, %s1313_s13  }
   0xd   :  { %1307 = dma.done.wait [#allocation3], 8192  }
   0xe   :  { %1308 = vsyncadd [#allocation3], 4294959104  ;;  %v1336_v0 = vld [vmem:[#allocation2 + $0x10] sm:$0xff]  ;;  %v1338_v1 = vld [vmem:[#allocation2] sm:$0xff] }
   0xf   :  { %2119 = vst [vmem:[#allocation8_spill] sm:$0xff] %v1338_v1  ;;  %94 = vadd.xlane.f32.xlu1 %v1336_v0  ;;  %90 = vadd.xlane.f32.xlu0 %v1338_v1  ;;  %v1342_v2 = vld [vmem:[#allocation2 + $0x18] sm:$0xff]  ;;  %v1344_v3 = vld [vmem:[#allocation2 + $0x8] sm:$0xff]  ;;  %v1350_v5 = vld [vmem:[#allocation2 + $0x20] sm:$0xff] }
  0x10   :  { %2120 = vst [vmem:[#allocation9_spill] sm:$0xff] %v1342_v2  ;;  %v1348_v4 = vld [vmem:[#allocation2 + $0x28] sm:$0xff]  ;;  %v1354_v6 = vld [vmem:[#allocation2 + $0x38] sm:$0xff]  ;;  %v1356_v7 = vld [vmem:[#allocation2 + $0x30] sm:$0xff] }
  0x11   :  { %v1360_v8 = vld [vmem:[#allocation2 + $0x48] sm:$0xff]  ;;  %v1362_v9 = vld [vmem:[#allocation2 + $0x40] sm:$0xff]  ;;  %v1366_v10 = vld [vmem:[#allocation2 + $0x58] sm:$0xff] }
  0x12   :  { %v1368_v11 = vld [vmem:[#allocation2 + $0x50] sm:$0xff]  ;;  %v1372_v12 = vld [vmem:[#allocation2 + $0x68] sm:$0xff]  ;;  %v1374_v13 = vld [vmem:[#allocation2 + $0x60] sm:$0xff] }
  0x13   :  { %96 = vadd.xlane.f32.xlu1 %v1342_v2  ;;  %92 = vadd.xlane.f32.xlu0 %v1344_v3  ;;  %v1378_v14 = vld [vmem:[#allocation2 + $0x78] sm:$0xff]  ;;  %v1380_v15 = vld [vmem:[#allocation2 + $0x70] sm:$0xff]  ;;  %v1384_v16 = vld [vmem:[#allocation2 + $0x88] sm:$0xff] }
  0x14   :  { %v1386_v17 = vld [vmem:[#allocation2 + $0x80] sm:$0xff]  ;;  %v1390_v18 = vld [vmem:[#allocation2 + $0x98] sm:$0xff]  ;;  %v1392_v19 = vld [vmem:[#allocation2 + $0x90] sm:$0xff] }
  0x15   :  { %v1396_v20 = vld [vmem:[#allocation2 + $0xa8] sm:$0xff]  ;;  %v1398_v21 = vld [vmem:[#allocation2 + $0xa0] sm:$0xff]  ;;  %v1402_v22 = vld [vmem:[#allocation2 + $0xb8] sm:$0xff] }
  0x16   :  { %v1404_v23 = vld [vmem:[#allocation2 + $0xb0] sm:$0xff]  ;;  %v1408_v24 = vld [vmem:[#allocation2 + $0xc8] sm:$0xff]  ;;  %v1410_v25 = vld [vmem:[#allocation2 + $0xc0] sm:$0xff] }
  0x17   :  { %100 = vadd.xlane.f32.xlu1 %v1348_v4  ;;  %98 = vadd.xlane.f32.xlu0 %v1350_v5  ;;  %v1414_v26 = vld [vmem:[#allocation2 + $0xd8] sm:$0xff]  ;;  %v1416_v27 = vld [vmem:[#allocation2 + $0xd0] sm:$0xff]  ;;  %v1420_v28 = vld [vmem:[#allocation2 + $0xe8] sm:$0xff] }
  0x18   :  { %v1422_v29 = vld [vmem:[#allocation2 + $0xe0] sm:$0xff]  ;;  %v1426_v30 = vld [vmem:[#allocation2 + $0xf8] sm:$0xff]  ;;  %v1428_v31 = vld [vmem:[#allocation2 + $0xf0] sm:$0xff] }
  0x19   :  { %v1432_v32 = vld [vmem:[#allocation2 + $0x108] sm:$0xff]  ;;  %v1434_v33 = vld [vmem:[#allocation2 + $0x100] sm:$0xff]  ;;  %v1438_v34 = vld [vmem:[#allocation2 + $0x118] sm:$0xff] }
  0x1a   :  { %v1440_v35 = vld [vmem:[#allocation2 + $0x110] sm:$0xff]  ;;  %v1444_v36 = vld [vmem:[#allocation2 + $0x128] sm:$0xff]  ;;  %v1446_v37 = vld [vmem:[#allocation2 + $0x120] sm:$0xff] }
  0x1b   :  { %104 = vadd.xlane.f32.xlu1 %v1354_v6  ;;  %102 = vadd.xlane.f32.xlu0 %v1356_v7  ;;  %v1450_v38 = vld [vmem:[#allocation2 + $0x138] sm:$0xff]  ;;  %v1452_v39 = vld [vmem:[#allocation2 + $0x130] sm:$0xff]  ;;  %v1456_v40 = vld [vmem:[#allocation2 + $0x148] sm:$0xff] }
  0x1c   :  { %v1458_v41 = vld [vmem:[#allocation2 + $0x140] sm:$0xff]  ;;  %v1462_v42 = vld [vmem:[#allocation2 + $0x158] sm:$0xff]  ;;  %v1464_v43 = vld [vmem:[#allocation2 + $0x150] sm:$0xff] }
  0x1d   :  { %v1468_v44 = vld [vmem:[#allocation2 + $0x168] sm:$0xff]  ;;  %v1470_v45 = vld [vmem:[#allocation2 + $0x160] sm:$0xff]  ;;  %v1474_v46 = vld [vmem:[#allocation2 + $0x178] sm:$0xff] }
  0x1e   :  { %v1476_v47 = vld [vmem:[#allocation2 + $0x170] sm:$0xff]  ;;  %v1480_v48 = vld [vmem:[#allocation2 + $0x188] sm:$0xff]  ;;  %v1482_v49 = vld [vmem:[#allocation2 + $0x180] sm:$0xff] }
  0x1f   :  { %108 = vadd.xlane.f32.xlu1 %v1360_v8  ;;  %106 = vadd.xlane.f32.xlu0 %v1362_v9  ;;  %v1486_v50 = vld [vmem:[#allocation2 + $0x198] sm:$0xff]  ;;  %v1488_v51 = vld [vmem:[#allocation2 + $0x190] sm:$0xff]  ;;  %v1492_v52 = vld [vmem:[#allocation2 + $0x1a8] sm:$0xff] }
  0x20   :  { %v1494_v53 = vld [vmem:[#allocation2 + $0x1a0] sm:$0xff]  ;;  %v1498_v54 = vld [vmem:[#allocation2 + $0x1b8] sm:$0xff]  ;;  %v1500_v55 = vld [vmem:[#allocation2 + $0x1b0] sm:$0xff] }
  0x21   :  { %v1504_v56 = vld [vmem:[#allocation2 + $0x1c8] sm:$0xff]  ;;  %v1506_v57 = vld [vmem:[#allocation2 + $0x1c0] sm:$0xff]  ;;  %v1510_v58 = vld [vmem:[#allocation2 + $0x1d8] sm:$0xff] }
  0x22   :  { %2121 = vst [vmem:[#allocation10_spill] sm:$0xff] %v1510_v58  ;;  %v1512_v59 = vld [vmem:[#allocation2 + $0x1d0] sm:$0xff]  ;;  %v1516_v60 = vld [vmem:[#allocation2 + $0x1e8] sm:$0xff]  ;;  %v1518_v61 = vld [vmem:[#allocation2 + $0x1e0] sm:$0xff] }
  0x23   :  { %112 = vadd.xlane.f32.xlu1 %v1366_v10  ;;  %110 = vadd.xlane.f32.xlu0 %v1368_v11  ;;  %2122 = vst [vmem:[#allocation11_spill] sm:$0xff] %v1512_v59  ;;  %2123 = vst [vmem:[#allocation12_spill] sm:$0xff] %v1516_v60  ;;  %v1522_v62 = vld [vmem:[#allocation2 + $0x1f8] sm:$0xff]  ;;  %v1524_v63 = vld [vmem:[#allocation2 + $0x1f0] sm:$0xff] }
  0x24   :  { %2124 = vst [vmem:[#allocation13_spill] sm:$0xff] %v1518_v61  ;;  %2125 = vst [vmem:[#allocation14_spill] sm:$0xff] %v1522_v62 }
  0x25   :  { %2126 = vst [vmem:[#allocation15_spill] sm:$0xff] %v1524_v63 }
  0x27   :  { %116 = vadd.xlane.f32.xlu1 %v1372_v12  ;;  %114 = vadd.xlane.f32.xlu0 %v1374_v13 }
  0x2b   :  { %120 = vadd.xlane.f32.xlu1 %v1378_v14  ;;  %118 = vadd.xlane.f32.xlu0 %v1380_v15 }
  0x2f   :  { %124 = vadd.xlane.f32.xlu1 %v1384_v16  ;;  %122 = vadd.xlane.f32.xlu0 %v1386_v17 }
  0x33   :  { %128 = vadd.xlane.f32.xlu1 %v1390_v18  ;;  %126 = vadd.xlane.f32.xlu0 %v1392_v19 }
  0x37   :  { %132 = vadd.xlane.f32.xlu1 %v1396_v20  ;;  %130 = vadd.xlane.f32.xlu0 %v1398_v21 }
  0x3b   :  { %136 = vadd.xlane.f32.xlu1 %v1402_v22  ;;  %134 = vadd.xlane.f32.xlu0 %v1404_v23 }
  0x3f   :  { %140 = vadd.xlane.f32.xlu1 %v1408_v24  ;;  %138 = vadd.xlane.f32.xlu0 %v1410_v25 }
  0x43   :  { %144 = vadd.xlane.f32.xlu1 %v1414_v26  ;;  %142 = vadd.xlane.f32.xlu0 %v1416_v27 }
  0x47   :  { %148 = vadd.xlane.f32.xlu1 %v1420_v28  ;;  %146 = vadd.xlane.f32.xlu0 %v1422_v29 }
  0x4b   :  { %152 = vadd.xlane.f32.xlu1 %v1426_v30  ;;  %150 = vadd.xlane.f32.xlu0 %v1428_v31 }
  0x4f   :  { %156 = vadd.xlane.f32.xlu1 %v1432_v32  ;;  %154 = vadd.xlane.f32.xlu0 %v1434_v33 }
  0x53   :  { %160 = vadd.xlane.f32.xlu1 %v1438_v34  ;;  %158 = vadd.xlane.f32.xlu0 %v1440_v35 }
  0x57   :  { %164 = vadd.xlane.f32.xlu1 %v1444_v36  ;;  %162 = vadd.xlane.f32.xlu0 %v1446_v37 }
  0x5b   :  { %168 = vadd.xlane.f32.xlu1 %v1450_v38  ;;  %166 = vadd.xlane.f32.xlu0 %v1452_v39 }
  0x5f   :  { %172 = vadd.xlane.f32.xlu1 %v1456_v40  ;;  %170 = vadd.xlane.f32.xlu0 %v1458_v41 }
  0x63   :  { %176 = vadd.xlane.f32.xlu1 %v1462_v42  ;;  %174 = vadd.xlane.f32.xlu0 %v1464_v43 }
  0x67   :  { %180 = vadd.xlane.f32.xlu1 %v1468_v44  ;;  %178 = vadd.xlane.f32.xlu0 %v1470_v45 }
  0x6b   :  { %184 = vadd.xlane.f32.xlu1 %v1474_v46  ;;  %182 = vadd.xlane.f32.xlu0 %v1476_v47 }
  0x6f   :  { %188 = vadd.xlane.f32.xlu1 %v1480_v48  ;;  %186 = vadd.xlane.f32.xlu0 %v1482_v49 }
  0x73   :  { %192 = vadd.xlane.f32.xlu1 %v1486_v50  ;;  %190 = vadd.xlane.f32.xlu0 %v1488_v51 }
  0x77   :  { %196 = vadd.xlane.f32.xlu1 %v1492_v52  ;;  %194 = vadd.xlane.f32.xlu0 %v1494_v53 }
  0x7b   :  { %200 = vadd.xlane.f32.xlu1 %v1498_v54  ;;  %198 = vadd.xlane.f32.xlu0 %v1500_v55 }
  0x7f   :  { %204 = vadd.xlane.f32.xlu1 %v1504_v56  ;;  %202 = vadd.xlane.f32.xlu0 %v1506_v57 }
  0x83   :  { %208 = vadd.xlane.f32.xlu1 %v1510_v58  ;;  %206 = vadd.xlane.f32.xlu0 %v1512_v59  ;;  %v284_v58 = vmul.f32 %v1344_v3, %v1344_v3  ;;  %v283_v59 = vmul.f32 %v1338_v1, %v1338_v1 }
  0x87   :  { %212 = vadd.xlane.f32.xlu1 %v1516_v60  ;;  %210 = vadd.xlane.f32.xlu0 %v1518_v61  ;;  %v286_v60 = vmul.f32 %v1342_v2, %v1342_v2  ;;  %v285_v61 = vmul.f32 %v1336_v0, %v1336_v0 }
  0x8b   :  { %216 = vadd.xlane.f32.xlu1 %v1522_v62  ;;  %214 = vadd.xlane.f32.xlu0 %v1524_v63  ;;  %v288_v62 = vmul.f32 %v1348_v4, %v1348_v4  ;;  %v287_v63 = vmul.f32 %v1350_v5, %v1350_v5 }
  0x8f   :  { %349 = vadd.xlane.f32.xlu1 %v284_v58  ;;  %347 = vadd.xlane.f32.xlu0 %v283_v59  ;;  %v290_v58 = vmul.f32 %v1354_v6, %v1354_v6  ;;  %v289_v59 = vmul.f32 %v1356_v7, %v1356_v7  ;;  %v294_v6 = vmul.f32 %v1366_v10, %v1366_v10 }
  0x90   :  { %v293_v7 = vmul.f32 %v1368_v11, %v1368_v11  ;;  %v298_v10 = vmul.f32 %v1378_v14, %v1378_v14  ;;  %v297_v11 = vmul.f32 %v1380_v15, %v1380_v15  ;;  %v302_v14 = vmul.f32 %v1390_v18, %v1390_v18 }
  0x91   :  { %v301_v15 = vmul.f32 %v1392_v19, %v1392_v19  ;;  %v306_v18 = vmul.f32 %v1402_v22, %v1402_v22  ;;  %v305_v19 = vmul.f32 %v1404_v23, %v1404_v23  ;;  %v310_v22 = vmul.f32 %v1414_v26, %v1414_v26 }
  0x92   :  { %v309_v23 = vmul.f32 %v1416_v27, %v1416_v27  ;;  %v314_v26 = vmul.f32 %v1426_v30, %v1426_v30  ;;  %v313_v27 = vmul.f32 %v1428_v31, %v1428_v31  ;;  %v318_v30 = vmul.f32 %v1438_v34, %v1438_v34 }
  0x93   :  { %353 = vadd.xlane.f32.xlu1 %v286_v60  ;;  %351 = vadd.xlane.f32.xlu0 %v285_v61  ;;  %v292_v60 = vmul.f32 %v1360_v8, %v1360_v8  ;;  %v291_v61 = vmul.f32 %v1362_v9, %v1362_v9  ;;  %v296_v8 = vmul.f32 %v1372_v12, %v1372_v12 }
  0x94   :  { %v295_v9 = vmul.f32 %v1374_v13, %v1374_v13  ;;  %v300_v12 = vmul.f32 %v1384_v16, %v1384_v16  ;;  %v299_v13 = vmul.f32 %v1386_v17, %v1386_v17  ;;  %v304_v16 = vmul.f32 %v1396_v20, %v1396_v20 }
  0x95   :  { %v303_v17 = vmul.f32 %v1398_v21, %v1398_v21  ;;  %v308_v20 = vmul.f32 %v1408_v24, %v1408_v24  ;;  %v307_v21 = vmul.f32 %v1410_v25, %v1410_v25  ;;  %v312_v24 = vmul.f32 %v1420_v28, %v1420_v28 }
  0x96   :  { %v311_v25 = vmul.f32 %v1422_v29, %v1422_v29  ;;  %v316_v28 = vmul.f32 %v1432_v32, %v1432_v32  ;;  %v315_v29 = vmul.f32 %v1434_v33, %v1434_v33  ;;  %v317_v31 = vmul.f32 %v1440_v35, %v1440_v35 }
  0x97   :  { %357 = vadd.xlane.f32.xlu1 %v288_v62  ;;  %355 = vadd.xlane.f32.xlu0 %v287_v63  ;;  %v320_v32 = vmul.f32 %v1444_v36, %v1444_v36  ;;  %v319_v33 = vmul.f32 %v1446_v37, %v1446_v37  ;;  %v322_v34 = vmul.f32 %v1450_v38, %v1450_v38 }
  0x98   :  { %v1544_v2 = vpop.xlane.xlu1 %94  ;;  %v1546_v1 = vpop.xlane.xlu0 %90  ;;  %v321_v35 = vmul.f32 %v1452_v39, %v1452_v39  ;;  %v324_v36 = vmul.f32 %v1456_v40, %v1456_v40  ;;  %v323_v37 = vmul.f32 %v1458_v41, %v1458_v41  ;;  %v326_v38 = vmul.f32 %v1462_v42, %v1462_v42 }
  0x99   :  { %v325_v39 = vmul.f32 %v1464_v43, %v1464_v43  ;;  %v328_v40 = vmul.f32 %v1468_v44, %v1468_v44  ;;  %v327_v41 = vmul.f32 %v1470_v45, %v1470_v45  ;;  %v330_v42 = vmul.f32 %v1474_v46, %v1474_v46 }
  0x9a   :  { %v329_v43 = vmul.f32 %v1476_v47, %v1476_v47  ;;  %v332_v44 = vmul.f32 %v1480_v48, %v1480_v48  ;;  %v331_v45 = vmul.f32 %v1482_v49, %v1482_v49  ;;  %v334_v46 = vmul.f32 %v1486_v50, %v1486_v50 }
  0x9b   :  { %361 = vadd.xlane.f32.xlu1 %v290_v58  ;;  %359 = vadd.xlane.f32.xlu0 %v289_v59  ;;  %v333_v47 = vmul.f32 %v1488_v51, %v1488_v51  ;;  %v336_v48 = vmul.f32 %v1492_v52, %v1492_v52  ;;  %v335_v49 = vmul.f32 %v1494_v53, %v1494_v53 }
  0x9c   :  { %v1552_v62 = vpop.xlane.xlu1 %96  ;;  %v1554_v63 = vpop.xlane.xlu0 %92  ;;  %v338_v50 = vmul.f32 %v1498_v54, %v1498_v54  ;;  %v337_v51 = vmul.f32 %v1500_v55, %v1500_v55  ;;  %v340_v52 = vmul.f32 %v1504_v56, %v1504_v56  ;;  %v339_v53 = vmul.f32 %v1506_v57, %v1506_v57  ;;  %v2135_v54 = vld [vmem:[#allocation10_spill] sm:$0xff]  ;;  %v2139_v56 = vld [vmem:[#allocation12_spill] sm:$0xff] }
  0x9d   :  { %v342_v55 = vmul.f32 %v2135_v54, %v2135_v54  ;;  %v344_v57 = vmul.f32 %v2139_v56, %v2139_v56  ;;  %v2143_v54 = vld [vmem:[#allocation14_spill] sm:$0xff] }
  0x9f   :  { %365 = vadd.xlane.f32.xlu1 %v292_v60  ;;  %363 = vadd.xlane.f32.xlu0 %v291_v61 }
  0xa0   :  { %v1560_v58 = vpop.xlane.xlu1 %100  ;;  %v1562_v59 = vpop.xlane.xlu0 %98 }
  0xa3   :  { %369 = vadd.xlane.f32.xlu1 %v294_v6  ;;  %367 = vadd.xlane.f32.xlu0 %v293_v7 }
  0xa4   :  { %v1568_v60 = vpop.xlane.xlu1 %104  ;;  %v1570_v61 = vpop.xlane.xlu0 %102 }
  0xa7   :  { %373 = vadd.xlane.f32.xlu1 %v296_v8  ;;  %371 = vadd.xlane.f32.xlu0 %v295_v9 }
  0xa8   :  { %v1576_v6 = vpop.xlane.xlu1 %108  ;;  %v1578_v7 = vpop.xlane.xlu0 %106 }
  0xab   :  { %377 = vadd.xlane.f32.xlu1 %v298_v10  ;;  %375 = vadd.xlane.f32.xlu0 %v297_v11 }
  0xac   :  { %v1584_v8 = vpop.xlane.xlu1 %112  ;;  %v1586_v9 = vpop.xlane.xlu0 %110 }
  0xaf   :  { %381 = vadd.xlane.f32.xlu1 %v300_v12  ;;  %379 = vadd.xlane.f32.xlu0 %v299_v13 }
  0xb0   :  { %v1592_v10 = vpop.xlane.xlu1 %116  ;;  %v1594_v11 = vpop.xlane.xlu0 %114 }
  0xb3   :  { %385 = vadd.xlane.f32.xlu1 %v302_v14  ;;  %383 = vadd.xlane.f32.xlu0 %v301_v15 }
  0xb4   :  { %v1600_v12 = vpop.xlane.xlu1 %120  ;;  %v1602_v13 = vpop.xlane.xlu0 %118 }
  0xb7   :  { %389 = vadd.xlane.f32.xlu1 %v304_v16  ;;  %387 = vadd.xlane.f32.xlu0 %v303_v17 }
  0xb8   :  { %v1608_v14 = vpop.xlane.xlu1 %124  ;;  %v1610_v15 = vpop.xlane.xlu0 %122 }
  0xbb   :  { %393 = vadd.xlane.f32.xlu1 %v306_v18  ;;  %391 = vadd.xlane.f32.xlu0 %v305_v19 }
  0xbc   :  { %v1616_v16 = vpop.xlane.xlu1 %128  ;;  %v1618_v17 = vpop.xlane.xlu0 %126 }
  0xbf   :  { %397 = vadd.xlane.f32.xlu1 %v308_v20  ;;  %395 = vadd.xlane.f32.xlu0 %v307_v21 }
  0xc0   :  { %v1624_v18 = vpop.xlane.xlu1 %132  ;;  %v1626_v19 = vpop.xlane.xlu0 %130 }
  0xc3   :  { %401 = vadd.xlane.f32.xlu1 %v310_v22  ;;  %399 = vadd.xlane.f32.xlu0 %v309_v23 }
  0xc4   :  { %v1632_v20 = vpop.xlane.xlu1 %136  ;;  %v1634_v21 = vpop.xlane.xlu0 %134 }
  0xc7   :  { %405 = vadd.xlane.f32.xlu1 %v312_v24  ;;  %403 = vadd.xlane.f32.xlu0 %v311_v25 }
  0xc8   :  { %v1640_v22 = vpop.xlane.xlu1 %140  ;;  %v1642_v23 = vpop.xlane.xlu0 %138 }
  0xcb   :  { %409 = vadd.xlane.f32.xlu1 %v314_v26  ;;  %407 = vadd.xlane.f32.xlu0 %v313_v27 }
  0xcc   :  { %v1648_v24 = vpop.xlane.xlu1 %144  ;;  %v1650_v25 = vpop.xlane.xlu0 %142 }
  0xcf   :  { %413 = vadd.xlane.f32.xlu1 %v316_v28  ;;  %411 = vadd.xlane.f32.xlu0 %v315_v29 }
  0xd0   :  { %v1656_v26 = vpop.xlane.xlu1 %148  ;;  %v1658_v27 = vpop.xlane.xlu0 %146 }
  0xd3   :  { %417 = vadd.xlane.f32.xlu1 %v318_v30  ;;  %415 = vadd.xlane.f32.xlu0 %v317_v31 }
  0xd4   :  { %v1664_v28 = vpop.xlane.xlu1 %152  ;;  %v1666_v29 = vpop.xlane.xlu0 %150 }
  0xd7   :  { %421 = vadd.xlane.f32.xlu1 %v320_v32  ;;  %419 = vadd.xlane.f32.xlu0 %v319_v33 }
  0xd8   :  { %v1672_v30 = vpop.xlane.xlu1 %156  ;;  %v1674_v31 = vpop.xlane.xlu0 %154 }
  0xdb   :  { %425 = vadd.xlane.f32.xlu1 %v322_v34  ;;  %423 = vadd.xlane.f32.xlu0 %v321_v35 }
  0xdc   :  { %v1680_v32 = vpop.xlane.xlu1 %160  ;;  %v1682_v33 = vpop.xlane.xlu0 %158 }
  0xdf   :  { %429 = vadd.xlane.f32.xlu1 %v324_v36  ;;  %427 = vadd.xlane.f32.xlu0 %v323_v37 }
  0xe0   :  { %v1688_v34 = vpop.xlane.xlu1 %164  ;;  %v1690_v35 = vpop.xlane.xlu0 %162 }
  0xe3   :  { %433 = vadd.xlane.f32.xlu1 %v326_v38  ;;  %431 = vadd.xlane.f32.xlu0 %v325_v39 }
  0xe4   :  { %v1696_v36 = vpop.xlane.xlu1 %168  ;;  %v1698_v37 = vpop.xlane.xlu0 %166 }
  0xe7   :  { %437 = vadd.xlane.f32.xlu1 %v328_v40  ;;  %435 = vadd.xlane.f32.xlu0 %v327_v41 }
  0xe8   :  { %v1704_v38 = vpop.xlane.xlu1 %172  ;;  %v1706_v39 = vpop.xlane.xlu0 %170 }
  0xeb   :  { %441 = vadd.xlane.f32.xlu1 %v330_v42  ;;  %439 = vadd.xlane.f32.xlu0 %v329_v43 }
  0xec   :  { %v1712_v40 = vpop.xlane.xlu1 %176  ;;  %v1714_v41 = vpop.xlane.xlu0 %174 }
  0xef   :  { %445 = vadd.xlane.f32.xlu1 %v332_v44  ;;  %443 = vadd.xlane.f32.xlu0 %v331_v45 }
  0xf0   :  { %v1720_v42 = vpop.xlane.xlu1 %180  ;;  %v1722_v43 = vpop.xlane.xlu0 %178 }
  0xf1   :  { %2127 = vst [vmem:[#allocation16_spill] sm:$0xff] %v1720_v42  ;;  %2128 = vst [vmem:[#allocation17_spill] sm:$0xff] %v1722_v43 }
  0xf3   :  { %449 = vadd.xlane.f32.xlu1 %v334_v46  ;;  %447 = vadd.xlane.f32.xlu0 %v333_v47 }
  0xf4   :  { %v1728_v44 = vpop.xlane.xlu1 %184  ;;  %v1730_v45 = vpop.xlane.xlu0 %182 }
  0xf5   :  { %2129 = vst [vmem:[#allocation18_spill] sm:$0xff] %v1728_v44  ;;  %2130 = vst [vmem:[#allocation19_spill] sm:$0xff] %v1730_v45 }
  0xf7   :  { %453 = vadd.xlane.f32.xlu1 %v336_v48  ;;  %451 = vadd.xlane.f32.xlu0 %v335_v49 }
  0xf8   :  { %v1736_v46 = vpop.xlane.xlu1 %188  ;;  %v1738_v47 = vpop.xlane.xlu0 %186 }
  0xf9   :  { %2131 = vst [vmem:[#allocation20_spill] sm:$0xff] %v1736_v46  ;;  %2132 = vst [vmem:[#allocation21_spill] sm:$0xff] %v1738_v47  ;;  %v2136_v46 = vld [vmem:[#allocation11_spill] sm:$0xff] }
  0xfa   :  { %v341_v47 = vmul.f32 %v2136_v46, %v2136_v46  ;;  %v346_v46 = vmul.f32 %v2143_v54, %v2143_v54  ;;  %v220_v54 = vmul.f32 0.0078125, %v1554_v63 }
  0xfb   :  { %457 = vadd.xlane.f32.xlu1 %v338_v50  ;;  %455 = vadd.xlane.f32.xlu0 %v337_v51 }
  0xfc   :  { %v1744_v48 = vpop.xlane.xlu1 %192  ;;  %v1746_v49 = vpop.xlane.xlu0 %190 }
  0xfd   :  { %2133 = vst [vmem:[#allocation22_spill] sm:$0xff] %v1744_v48  ;;  %2134 = vst [vmem:[#allocation23_spill] sm:$0xff] %v1746_v49  ;;  %v2140_v48 = vld [vmem:[#allocation13_spill] sm:$0xff] }
  0xfe   :  { %v343_v49 = vmul.f32 %v2140_v48, %v2140_v48 }
  0xff   :  { %461 = vadd.xlane.f32.xlu1 %v340_v52  ;;  %459 = vadd.xlane.f32.xlu0 %v339_v53 }
 0x100   :  { %v1752_v50 = vpop.xlane.xlu1 %196  ;;  %v1754_v51 = vpop.xlane.xlu0 %194 }
 0x101   :  { %2137 = vst [vmem:[#allocation10_spill] sm:$0xff] %v1752_v50  ;;  %2138 = vst [vmem:[#allocation11_spill] sm:$0xff] %v1754_v51  ;;  %v2144_v50 = vld [vmem:[#allocation15_spill] sm:$0xff] }
 0x102   :  { %v345_v51 = vmul.f32 %v2144_v50, %v2144_v50  ;;  %v224_v50 = vmul.f32 0.0078125, %v1560_v58  ;;  %v540_v58 = vmul.f32 %v220_v54, %v220_v54 }
 0x103   :  { %465 = vadd.xlane.f32.xlu1 %v342_v55  ;;  %463 = vadd.xlane.f32.xlu0 %v341_v47 }
 0x104   :  { %v1760_v52 = vpop.xlane.xlu1 %200  ;;  %v1762_v53 = vpop.xlane.xlu0 %198 }
 0x105   :  { %2141 = vst [vmem:[#allocation12_spill] sm:$0xff] %v1760_v52  ;;  %2142 = vst [vmem:[#allocation13_spill] sm:$0xff] %v1762_v53  ;;  %v221_v53 = vmul.f32 0.0078125, %v1544_v2 }
 0x107   :  { %469 = vadd.xlane.f32.xlu1 %v344_v57  ;;  %467 = vadd.xlane.f32.xlu0 %v343_v49  ;;  %v219_v49 = vmul.f32 0.0078125, %v1546_v1  ;;  %v222_v57 = vmul.f32 0.0078125, %v1552_v62  ;;  %v228_v1 = vmul.f32 0.0078125, %v1576_v6  ;;  %v227_v62 = vmul.f32 0.0078125, %v1578_v7 }
 0x108   :  { %v1768_v55 = vpop.xlane.xlu1 %204  ;;  %v1770_v47 = vpop.xlane.xlu0 %202 }
 0x109   :  { %2145 = vst [vmem:[#allocation14_spill] sm:$0xff] %v1768_v55  ;;  %2146 = vst [vmem:[#allocation15_spill] sm:$0xff] %v1770_v47  ;;  %v223_v55 = vmul.f32 0.0078125, %v1562_v59  ;;  %v539_v2 = vmul.f32 %v219_v49, %v219_v49  ;;  %v1792_v63 = vmul.f32 %v222_v57, %v222_v57  ;;  %v230_v59 = vmul.f32 0.0078125, %v1584_v8 }
 0x10a   :  { %v1796_v47 = vmul.f32 %v224_v50, %v224_v50  ;;  %v234_v8 = vmul.f32 0.0078125, %v1600_v12  ;;  %v1812_v57 = vmul.f32 %v228_v1, %v228_v1  ;;  %v239_v1 = vmul.f32 0.0078125, %v1626_v19 }
 0x10b   :  { %473 = vadd.xlane.f32.xlu1 %v346_v46  ;;  %471 = vadd.xlane.f32.xlu0 %v345_v51  ;;  %v226_v51 = vmul.f32 0.0078125, %v1568_v60  ;;  %v232_v60 = vmul.f32 0.0078125, %v1592_v10  ;;  %v236_v10 = vmul.f32 0.0078125, %v1608_v14  ;;  %v1818_v54 = vmul.f32 %v230_v59, %v230_v59 }
 0x10c   :  { %v1772_v56 = vpop.xlane.xlu1 %208  ;;  %v1774_v48 = vpop.xlane.xlu0 %206 }
 0x10d   :  { %2147 = vst [vmem:[#allocation24_spill] sm:$0xff] %v1772_v56  ;;  %2148 = vst [vmem:[#allocation25_spill] sm:$0xff] %v1774_v48  ;;  %v225_v48 = vmul.f32 0.0078125, %v1570_v61  ;;  %v1788_v56 = vmul.f32 %v221_v53, %v221_v53  ;;  %v231_v61 = vmul.f32 0.0078125, %v1594_v11  ;;  %v1806_v7 = vmul.f32 %v226_v51, %v226_v51 }
 0x10e   :  { %v235_v11 = vmul.f32 0.0078125, %v1610_v15  ;;  %v238_v51 = vmul.f32 0.0078125, %v1616_v16  ;;  %v1834_v45 = vmul.f32 %v236_v10, %v236_v10  ;;  %v243_v10 = vmul.f32 0.0078125, %v1642_v23 }
 0x10f   :  { %v1808_v49 = vmul.f32 %v225_v48, %v225_v48  ;;  %v237_v48 = vmul.f32 0.0078125, %v1618_v17  ;;  %v1826_v12 = vmul.f32 %v231_v61, %v231_v61  ;;  %v242_v17 = vmul.f32 0.0078125, %v1632_v20 }
 0x110   :  { %v1782_v52 = vpop.xlane.xlu1 %212  ;;  %v1784_v46 = vpop.xlane.xlu0 %210  ;;  %v1836_v16 = vmul.f32 %v235_v11, %v235_v11  ;;  %v1840_v61 = vmul.f32 %v238_v51, %v238_v51 }
 0x111   :  { %2149 = vst [vmem:[#allocation26_spill] sm:$0xff] %v1782_v52  ;;  %2150 = vst [vmem:[#allocation27_spill] sm:$0xff] %v1784_v46  ;;  %v229_v52 = vmul.f32 0.0078125, %v1586_v9  ;;  %v1798_v46 = vmul.f32 %v223_v55, %v223_v55  ;;  %v233_v9 = vmul.f32 0.0078125, %v1602_v13  ;;  %v1814_v55 = vmul.f32 %v227_v62, %v227_v62 }
 0x112   :  { %v240_v13 = vmul.f32 0.0078125, %v1624_v18  ;;  %v1842_v18 = vmul.f32 %v237_v48, %v237_v48  ;;  %v1850_v51 = vmul.f32 %v242_v17, %v242_v17  ;;  %v247_v17 = vmul.f32 0.0078125, %v1658_v27 }
 0x113   :  { %v1820_v50 = vmul.f32 %v229_v52, %v229_v52  ;;  %v1832_v15 = vmul.f32 %v233_v9, %v233_v9  ;;  %v1846_v9 = vmul.f32 %v239_v1, %v239_v1 }
 0x114   :  { %v1802_v53 = vpop.xlane.xlu1 %216  ;;  %v1804_v6 = vpop.xlane.xlu0 %214  ;;  %v1872_v27 = vmul.f32 %v247_v17, %v247_v17 }
 0x115   :  { %2151 = vst [vmem:[#allocation28_spill] sm:$0xff] %v1802_v53  ;;  %2152 = vst [vmem:[#allocation29_spill] sm:$0xff] %v1804_v6  ;;  %v1824_v6 = vmul.f32 %v232_v60, %v232_v60  ;;  %v1830_v53 = vmul.f32 %v234_v8, %v234_v8  ;;  %v241_v60 = vmul.f32 0.0078125, %v1634_v21  ;;  %v1844_v8 = vmul.f32 %v240_v13, %v240_v13 }
 0x117   :  { %v1852_v48 = vmul.f32 %v241_v60, %v241_v60 }
 0x118   :  { %v350_v62 = vpop.xlane.xlu1 %349  ;;  %v348_v14 = vpop.xlane.xlu0 %347 }
 0x119   :  { %v476_v52 = vmul.f32 0.0078125, %v350_v62  ;;  %v475_v59 = vmul.f32 0.0078125, %v348_v14  ;;  %v244_v62 = vmul.f32 0.0078125, %v1640_v22 }
 0x11b   :  { %v604_v19 = vsub.f32 %v476_v52, %v540_v58  ;;  %v603_v44 = vsub.f32 %v475_v59, %v539_v2  ;;  %v246_v2 = vmul.f32 0.0078125, %v1648_v24  ;;  %v245_v58 = vmul.f32 0.0078125, %v1650_v25 }
 0x11c   :  { %v354_v11 = vpop.xlane.xlu1 %353  ;;  %v352_v14 = vpop.xlane.xlu0 %351  ;;  %v1858_v52 = vmul.f32 %v244_v62, %v244_v62  ;;  %v1860_v59 = vmul.f32 %v243_v10, %v243_v10 }
 0x11d   :  { %v668_v43 = vmax.f32 %v604_v19, 0.0  ;;  %v667_v20 = vmax.f32 %v603_v44, 0.0  ;;  %v478_v42 = vmul.f32 0.0078125, %v354_v11  ;;  %v477_v21 = vmul.f32 0.0078125, %v352_v14 }
 0x11e   :  { %v248_v44 = vmul.f32 0.0078125, %v1656_v26 }
 0x11f   :  { %v732_v13 = vadd.f32 1e-05, %v668_v43  ;;  %v731_v1 = vadd.f32 1e-05, %v667_v20  ;;  %v606_v22 = vsub.f32 %v478_v42, %v1792_v63  ;;  %v605_v23 = vsub.f32 %v477_v21, %v1788_v56 }
 0x120   :  { %v358_v60 = vpop.xlane.xlu1 %357  ;;  %v356_v19 = vpop.xlane.xlu0 %355  ;;  %v1864_v43 = vmul.f32 %v246_v2, %v246_v2  ;;  %v250_v42 = vmul.f32 0.0078125, %v1664_v28  ;;  %v1867_v63 = vmul.f32 %v245_v58, %v245_v58  ;;  %v1870_v14 = vmul.f32 %v248_v44, %v248_v44 }
 0x121   :  { %1080 = vrsqrt.f32 %v732_v13  ;;  %v670_v24 = vmax.f32 %v606_v22, 0.0  ;;  %v669_v11 = vmax.f32 %v605_v23, 0.0  ;;  %v480_v25 = vmul.f32 0.0078125, %v358_v60 }
 0x122   :  { %1082 = vrsqrt.f32 %v731_v1  ;;  %v479_v56 = vmul.f32 0.0078125, %v356_v19  ;;  %v249_v20 = vmul.f32 0.0078125, %v1666_v29  ;;  %v1876_v58 = vmul.f32 %v250_v42, %v250_v42 }
 0x123   :  { %v734_v62 = vadd.f32 1e-05, %v670_v24  ;;  %v733_v10 = vadd.f32 1e-05, %v669_v11  ;;  %v608_v26 = vsub.f32 %v480_v25, %v1796_v47  ;;  %v252_v23 = vmul.f32 0.0078125, %v1672_v30 }
 0x124   :  { %v607_v21 = vsub.f32 %v479_v56, %v1798_v46  ;;  %v362_v2 = vpop.xlane.xlu1 %361  ;;  %v360_v13 = vpop.xlane.xlu0 %359  ;;  %v251_v44 = vmul.f32 0.0078125, %v1674_v31  ;;  %v1882_v46 = vmul.f32 %v249_v20, %v249_v20  ;;  %v254_v19 = vmul.f32 0.0078125, %v1680_v32 }
 0x125   :  { %1084 = vrsqrt.f32 %v734_v62  ;;  %v672_v28 = vmax.f32 %v608_v26, 0.0  ;;  %v482_v1 = vmul.f32 0.0078125, %v362_v2  ;;  %v481_v22 = vmul.f32 0.0078125, %v360_v13 }
 0x126   :  { %1086 = vrsqrt.f32 %v733_v10  ;;  %v671_v47 = vmax.f32 %v607_v21, 0.0  ;;  %v253_v24 = vmul.f32 0.0078125, %v1682_v33  ;;  %v1886_v10 = vmul.f32 %v252_v23, %v252_v23 }
 0x127   :  { %v736_v17 = vadd.f32 1e-05, %v672_v28  ;;  %v610_v60 = vsub.f32 %v482_v1, %v1806_v7  ;;  %v609_v29 = vsub.f32 %v481_v22, %v1808_v49  ;;  %v256_v31 = vmul.f32 0.0078125, %v1688_v34 }
 0x128   :  { %v735_v11 = vadd.f32 1e-05, %v671_v47  ;;  %v366_v25 = vpop.xlane.xlu1 %365  ;;  %v364_v42 = vpop.xlane.xlu0 %363  ;;  %v1889_v49 = vmul.f32 %v251_v44, %v251_v44  ;;  %v1892_v33 = vmul.f32 %v254_v19, %v254_v19  ;;  %v1894_v21 = vmul.f32 %v253_v24, %v253_v24 }
 0x129   :  { %1088 = vrsqrt.f32 %v736_v17  ;;  %v674_v30 = vmax.f32 %v610_v60, 0.0  ;;  %v673_v56 = vmax.f32 %v609_v29, 0.0  ;;  %v484_v62 = vmul.f32 0.0078125, %v366_v25 }
 0x12a   :  { %1090 = vrsqrt.f32 %v735_v11  ;;  %v483_v7 = vmul.f32 0.0078125, %v364_v42  ;;  %v255_v2 = vmul.f32 0.0078125, %v1690_v35  ;;  %v1898_v44 = vmul.f32 %v256_v31, %v256_v31 }
 0x12b   :  { %v738_v26 = vadd.f32 1e-05, %v674_v30  ;;  %v737_v20 = vadd.f32 1e-05, %v673_v56  ;;  %v612_v32 = vsub.f32 %v484_v62, %v1812_v57  ;;  %v258_v17 = vmul.f32 0.0078125, %v1696_v36  ;;  %v2153_v36 = vld [vmem:[#allocation8_spill] sm:$0xff] }
 0x12c   :  { %v611_v13 = vsub.f32 %v483_v7, %v1814_v55  ;;  %v370_v28 = vpop.xlane.xlu1 %369  ;;  %v368_v1 = vpop.xlane.xlu0 %367  ;;  %v1904_v57 = vld [vmem:[%s2109_s1] ss:$0 sm:$0xff]  ;;  %v1909_v11 = vmul.f32 %v255_v2, %v255_v2  ;;  %v257_v25 = vmul.f32 0.0078125, %v1698_v37  ;;  %v2154_v37 = vld [vmem:[#allocation9_spill] sm:$0xff] }
 0x12d   :  { %1092 = vrsqrt.f32 %v738_v26  ;;  %v676_v34 = vmax.f32 %v612_v32, 0.0  ;;  %v486_v22 = vmul.f32 0.0078125, %v370_v28  ;;  %v485_v23 = vmul.f32 0.0078125, %v368_v1 }
 0x12e   :  { %v1081_v47 = vpop.eup %1080  ;;  %1094 = vrsqrt.f32 %v737_v20  ;;  %v675_v35 = vmax.f32 %v611_v13, 0.0  ;;  %v1915_v2 = vmul.f32 %v258_v17, %v258_v17 }
 0x12f   :  { %v1083_v60 = vpop.eup %1082  ;;  %v860_v55 = vmul.f32 %v1081_v47, %v1344_v3  ;;  %v740_v29 = vadd.f32 1e-05, %v676_v34  ;;  %v614_v19 = vsub.f32 %v486_v22, %v1818_v54  ;;  %v613_v24 = vsub.f32 %v485_v23, %v1820_v50 }
 0x130   :  { %v859_v42 = vmul.f32 %v1083_v60, %v2153_v36  ;;  %v739_v30 = vadd.f32 1e-05, %v675_v35  ;;  %v374_v56 = vpop.xlane.xlu1 %373  ;;  %v372_v62 = vpop.xlane.xlu0 %371  ;;  %v260_v34 = vmul.f32 0.0078125, %v1704_v38 }
 0x131   :  { %v931_v31 = vmul.f32 %v1904_v57, %v860_v55  ;;  %1096 = vrsqrt.f32 %v740_v29  ;;  %v678_v7 = vmax.f32 %v614_v19, 0.0  ;;  %v677_v26 = vmax.f32 %v613_v24, 0.0 }
 0x132   :  { %v1085_v3 = vpop.eup %1084  ;;  %v930_v20 = vmul.f32 %v1904_v57, %v859_v42  ;;  %1098 = vrsqrt.f32 %v739_v30  ;;  %v488_v54 = vmul.f32 0.0078125, %v374_v56  ;;  %v487_v50 = vmul.f32 0.0078125, %v372_v62 }
 0x133   :  { %v1087_v32 = vpop.eup %1086  ;;  %995 = vst [vmem:[#allocation5 + $0x8] sm:$0xff] %v931_v31  ;;  %v862_v13 = vmul.f32 %v1085_v3, %v2154_v37  ;;  %v742_v28 = vadd.f32 1e-05, %v678_v7  ;;  %v741_v1 = vadd.f32 1e-05, %v677_v26  ;;  %v1924_v30 = vmul.f32 %v257_v25, %v257_v25  ;;  %v1208_v37 = vld [vmem:[#allocation2 + $0x38] sm:$0xff] }
 0x134   :  { %994 = vst [vmem:[#allocation5] sm:$0xff] %v930_v20  ;;  %v861_v22 = vmul.f32 %v1087_v32, %v1336_v0  ;;  %v616_v23 = vsub.f32 %v488_v54, %v1824_v6  ;;  %v615_v47 = vsub.f32 %v487_v50, %v1826_v12  ;;  %v378_v35 = vpop.xlane.xlu1 %377  ;;  %v376_v60 = vpop.xlane.xlu0 %375  ;;  %v259_v56 = vmul.f32 0.0078125, %v1706_v39 }
 0x135   :  { %v933_v55 = vmul.f32 %v1904_v57, %v862_v13  ;;  %1100 = vrsqrt.f32 %v742_v28  ;;  %v490_v17 = vmul.f32 0.0078125, %v378_v35  ;;  %v489_v29 = vmul.f32 0.0078125, %v376_v60 }
 0x136   :  { %v1089_v19 = vpop.eup %1088  ;;  %v932_v24 = vmul.f32 %v1904_v57, %v861_v22  ;;  %1102 = vrsqrt.f32 %v741_v1  ;;  %v680_v36 = vmax.f32 %v616_v23, 0.0  ;;  %v679_v38 = vmax.f32 %v615_v47, 0.0  ;;  %v1209_v22 = vld [vmem:[#allocation2 + $0x30] sm:$0xff] }
 0x137   :  { %v1091_v42 = vpop.eup %1090  ;;  %997 = vst [vmem:[#allocation5 + $0x18] sm:$0xff] %v933_v55  ;;  %v864_v0 = vmul.f32 %v1089_v19, %v1348_v4  ;;  %v618_v6 = vsub.f32 %v490_v17, %v1830_v53  ;;  %v617_v12 = vsub.f32 %v489_v29, %v1832_v15  ;;  %v1932_v4 = vmul.f32 %v260_v34, %v260_v34 }
 0x138   :  { %996 = vst [vmem:[#allocation5 + $0x10] sm:$0xff] %v932_v24  ;;  %v863_v62 = vmul.f32 %v1091_v42, %v1350_v5  ;;  %v744_v31 = vadd.f32 1e-05, %v680_v36  ;;  %v743_v7 = vadd.f32 1e-05, %v679_v38  ;;  %v382_v26 = vpop.xlane.xlu1 %381  ;;  %v380_v3 = vpop.xlane.xlu0 %379  ;;  %v262_v1 = vmul.f32 0.0078125, %v1712_v40 }
 0x139   :  { %v935_v20 = vmul.f32 %v1904_v57, %v864_v0  ;;  %v682_v25 = vmax.f32 %v618_v6, 0.0  ;;  %v681_v54 = vmax.f32 %v617_v12, 0.0  ;;  %v492_v50 = vmul.f32 0.0078125, %v382_v26 }
 0x13a   :  { %v1093_v32 = vpop.eup %1092  ;;  %v934_v53 = vmul.f32 %v1904_v57, %v863_v62  ;;  %1104 = vrsqrt.f32 %v744_v31  ;;  %v491_v15 = vmul.f32 0.0078125, %v380_v3  ;;  %v1940_v42 = vmul.f32 %v259_v56, %v259_v56  ;;  %v1211_v62 = vld [vmem:[#allocation2 + $0x40] sm:$0xff] }
 0x13b   :  { %v1095_v39 = vpop.eup %1094  ;;  %999 = vst [vmem:[#allocation5 + $0x28] sm:$0xff] %v935_v20  ;;  %v866_v5 = vmul.f32 %v1208_v37, %v1093_v32  ;;  %1106 = vrsqrt.f32 %v743_v7  ;;  %v746_v13 = vadd.f32 1e-05, %v682_v25  ;;  %v745_v28 = vadd.f32 1e-05, %v681_v54 }
 0x13c   :  { %998 = vst [vmem:[#allocation5 + $0x20] sm:$0xff] %v934_v53  ;;  %v865_v23 = vmul.f32 %v1209_v22, %v1095_v39  ;;  %v620_v47 = vsub.f32 %v492_v50, %v1834_v45  ;;  %v619_v34 = vsub.f32 %v491_v15, %v1836_v16  ;;  %v386_v35 = vpop.xlane.xlu1 %385  ;;  %v384_v60 = vpop.xlane.xlu0 %383  ;;  %v1210_v45 = vld [vmem:[#allocation2 + $0x48] sm:$0xff]  ;;  %v261_v12 = vmul.f32 0.0078125, %v1714_v41  ;;  %v1212_v15 = vld [vmem:[#allocation2 + $0x58] sm:$0xff] }
 0x13d   :  { %v937_v55 = vmul.f32 %v1904_v57, %v866_v5  ;;  %1108 = vrsqrt.f32 %v746_v13  ;;  %v494_v17 = vmul.f32 0.0078125, %v386_v35  ;;  %v493_v29 = vmul.f32 0.0078125, %v384_v60 }
 0x13e   :  { %v1097_v19 = vpop.eup %1096  ;;  %v936_v24 = vmul.f32 %v1904_v57, %v865_v23  ;;  %1110 = vrsqrt.f32 %v745_v28  ;;  %v684_v36 = vmax.f32 %v620_v47, 0.0  ;;  %v683_v40 = vmax.f32 %v619_v34, 0.0  ;;  %v1213_v28 = vld [vmem:[#allocation2 + $0x50] sm:$0xff] }
 0x13f   :  { %v1099_v38 = vpop.eup %1098  ;;  %1001 = vst [vmem:[#allocation5 + $0x38] sm:$0xff] %v937_v55  ;;  %v868_v0 = vmul.f32 %v1210_v45, %v1097_v19  ;;  %v622_v16 = vsub.f32 %v494_v17, %v1840_v61  ;;  %v621_v6 = vsub.f32 %v493_v29, %v1842_v18  ;;  %v1946_v53 = vmul.f32 %v262_v1, %v262_v1 }
 0x140   :  { %1000 = vst [vmem:[#allocation5 + $0x30] sm:$0xff] %v936_v24  ;;  %v867_v31 = vmul.f32 %v1211_v62, %v1099_v38  ;;  %v748_v7 = vadd.f32 1e-05, %v684_v36  ;;  %v747_v26 = vadd.f32 1e-05, %v683_v40  ;;  %v390_v3 = vpop.xlane.xlu1 %389  ;;  %v388_v20 = vpop.xlane.xlu0 %387  ;;  %v1949_v13 = vmul.f32 %v261_v12, %v261_v12  ;;  %v2155_v36 = vld [vmem:[#allocation16_spill] sm:$0xff] }
 0x141   :  { %v939_v25 = vmul.f32 %v1904_v57, %v868_v0  ;;  %v686_v56 = vmax.f32 %v622_v16, 0.0  ;;  %v685_v54 = vmax.f32 %v621_v6, 0.0  ;;  %v496_v50 = vmul.f32 0.0078125, %v390_v3  ;;  %v2156_v38 = vld [vmem:[#allocation17_spill] sm:$0xff]  ;;  %v2157_v16 = vld [vmem:[#allocation18_spill] sm:$0xff] }
 0x142   :  { %v1101_v32 = vpop.eup %1100  ;;  %v938_v61 = vmul.f32 %v1904_v57, %v867_v31  ;;  %1112 = vrsqrt.f32 %v748_v7  ;;  %v495_v18 = vmul.f32 0.0078125, %v388_v20  ;;  %v264_v40 = vmul.f32 0.0078125, %v2155_v36  ;;  %v1214_v12 = vld [vmem:[#allocation2 + $0x68] sm:$0xff]  ;;  %v1215_v20 = vld [vmem:[#allocation2 + $0x60] sm:$0xff] }
 0x143   :  { %v1103_v41 = vpop.eup %1102  ;;  %1003 = vst [vmem:[#allocation5 + $0x48] sm:$0xff] %v939_v25  ;;  %v870_v39 = vmul.f32 %v1212_v15, %v1101_v32  ;;  %1114 = vrsqrt.f32 %v747_v26  ;;  %v750_v37 = vadd.f32 1e-05, %v686_v56  ;;  %v749_v5 = vadd.f32 1e-05, %v685_v54 }
 0x144   :  { %1002 = vst [vmem:[#allocation5 + $0x40] sm:$0xff] %v938_v61  ;;  %v869_v22 = vmul.f32 %v1213_v28, %v1103_v41  ;;  %v624_v23 = vsub.f32 %v496_v50, %v1844_v8  ;;  %v623_v1 = vsub.f32 %v495_v18, %v1846_v9  ;;  %v394_v47 = vpop.xlane.xlu1 %393  ;;  %v392_v34 = vpop.xlane.xlu0 %391  ;;  %v263_v45 = vmul.f32 0.0078125, %v2156_v38  ;;  %v2158_v61 = vld [vmem:[#allocation19_spill] sm:$0xff]  ;;  %v1217_v28 = vld [vmem:[#allocation2 + $0x70] sm:$0xff] }
 0x145   :  { %v941_v35 = vmul.f32 %v1904_v57, %v870_v39  ;;  %1116 = vrsqrt.f32 %v750_v37  ;;  %v498_v60 = vmul.f32 0.0078125, %v394_v47  ;;  %v497_v55 = vmul.f32 0.0078125, %v392_v34  ;;  %v1216_v39 = vld [vmem:[#allocation2 + $0x78] sm:$0xff] }
 0x146   :  { %v940_v17 = vmul.f32 %v1904_v57, %v869_v22  ;;  %1118 = vrsqrt.f32 %v749_v5  ;;  %v688_v29 = vmax.f32 %v624_v23, 0.0  ;;  %v687_v19 = vmax.f32 %v623_v1, 0.0 }
 0x147   :  { %v1105_v24 = vpop.eup %1104  ;;  %1005 = vst [vmem:[#allocation5 + $0x58] sm:$0xff] %v941_v35  ;;  %v626_v8 = vsub.f32 %v498_v60, %v1850_v51  ;;  %v625_v9 = vsub.f32 %v497_v55, %v1852_v48  ;;  %v266_v6 = vmul.f32 0.0078125, %v2157_v16  ;;  %v265_v51 = vmul.f32 0.0078125, %v2158_v61  ;;  %v1218_v16 = vld [vmem:[#allocation2 + $0x88] sm:$0xff] }
 0x148   :  { %v1107_v0 = vpop.eup %1106  ;;  %1004 = vst [vmem:[#allocation5 + $0x50] sm:$0xff] %v940_v17  ;;  %v872_v62 = vmul.f32 %v1214_v12, %v1105_v24  ;;  %v752_v31 = vadd.f32 1e-05, %v688_v29  ;;  %v751_v7 = vadd.f32 1e-05, %v687_v19  ;;  %v398_v26 = vpop.xlane.xlu1 %397  ;;  %v1967_v38 = vmul.f32 %v264_v40, %v264_v40 }
 0x149   :  { %v396_v3 = vpop.xlane.xlu0 %395  ;;  %v871_v25 = vmul.f32 %v1215_v20, %v1107_v0  ;;  %v690_v56 = vmax.f32 %v626_v8, 0.0  ;;  %v689_v54 = vmax.f32 %v625_v9, 0.0  ;;  %v500_v50 = vmul.f32 0.0078125, %v398_v26 }
 0x14a   :  { %v1109_v32 = vpop.eup %1108  ;;  %v943_v48 = vmul.f32 %v1904_v57, %v872_v62  ;;  %1120 = vrsqrt.f32 %v752_v31  ;;  %v499_v18 = vmul.f32 0.0078125, %v396_v3  ;;  %v1969_v8 = vmul.f32 %v263_v45, %v263_v45  ;;  %v1219_v3 = vld [vmem:[#allocation2 + $0x80] sm:$0xff] }
 0x14b   :  { %v1111_v41 = vpop.eup %1110  ;;  %v942_v15 = vmul.f32 %v1904_v57, %v871_v25  ;;  %v874_v37 = vmul.f32 %v1216_v39, %v1109_v32  ;;  %1122 = vrsqrt.f32 %v751_v7  ;;  %v754_v5 = vadd.f32 1e-05, %v690_v56  ;;  %v1220_v32 = vld [vmem:[#allocation2 + $0x98] sm:$0xff] }
 0x14c   :  { %1007 = vst [vmem:[#allocation5 + $0x68] sm:$0xff] %v943_v48  ;;  %v873_v22 = vmul.f32 %v1217_v28, %v1111_v41  ;;  %v753_v23 = vadd.f32 1e-05, %v689_v54  ;;  %v628_v1 = vsub.f32 %v500_v50, %v1858_v52  ;;  %v627_v47 = vsub.f32 %v499_v18, %v1860_v59  ;;  %v402_v34 = vpop.xlane.xlu1 %401  ;;  %v1221_v18 = vld [vmem:[#allocation2 + $0x90] sm:$0xff] }
 0x14d   :  { %v400_v35 = vpop.xlane.xlu0 %399  ;;  %1006 = vst [vmem:[#allocation5 + $0x60] sm:$0xff] %v942_v15  ;;  %v945_v60 = vmul.f32 %v1904_v57, %v874_v37  ;;  %1124 = vrsqrt.f32 %v754_v5  ;;  %v502_v55 = vmul.f32 0.0078125, %v402_v34  ;;  %v1973_v0 = vmul.f32 %v266_v6, %v266_v6 }
 0x14e   :  { %v501_v17 = vmul.f32 0.0078125, %v400_v35  ;;  %v944_v29 = vmul.f32 %v1904_v57, %v873_v22  ;;  %1126 = vrsqrt.f32 %v753_v23  ;;  %v692_v19 = vmax.f32 %v628_v1, 0.0 }
 0x14f   :  { %v691_v24 = vmax.f32 %v627_v47, 0.0  ;;  %v1113_v36 = vpop.eup %1112  ;;  %1009 = vst [vmem:[#allocation5 + $0x78] sm:$0xff] %v945_v60  ;;  %v630_v52 = vsub.f32 %v502_v55, %v1864_v43  ;;  %v1975_v54 = vmul.f32 %v265_v51, %v265_v51  ;;  %v2159_v60 = vld [vmem:[#allocation20_spill] sm:$0xff] }
 0x150   :  { %v629_v59 = vsub.f32 %v501_v17, %v1867_v63  ;;  %v1115_v9 = vpop.eup %1114  ;;  %1008 = vst [vmem:[#allocation5 + $0x70] sm:$0xff] %v944_v29  ;;  %v876_v12 = vmul.f32 %v1218_v16, %v1113_v36  ;;  %v756_v62 = vadd.f32 1e-05, %v692_v19  ;;  %v406_v7 = vpop.xlane.xlu1 %405  ;;  %v268_v55 = vmul.f32 0.0078125, %v2159_v60  ;;  %v2160_v17 = vld [vmem:[#allocation21_spill] sm:$0xff] }
 0x151   :  { %v755_v31 = vadd.f32 1e-05, %v691_v24  ;;  %v404_v26 = vpop.xlane.xlu0 %403  ;;  %v875_v40 = vmul.f32 %v1219_v3, %v1115_v9  ;;  %v694_v20 = vmax.f32 %v630_v52, 0.0  ;;  %v504_v25 = vmul.f32 0.0078125, %v406_v7  ;;  %v2161_v24 = vld [vmem:[#allocation22_spill] sm:$0xff]  ;;  %v1222_v52 = vld [vmem:[#allocation2 + $0xa8] sm:$0xff] }
 0x152   :  { %v693_v45 = vmax.f32 %v629_v59, 0.0  ;;  %v1117_v56 = vpop.eup %1116  ;;  %v947_v43 = vmul.f32 %v1904_v57, %v876_v12  ;;  %1128 = vrsqrt.f32 %v756_v62  ;;  %v503_v63 = vmul.f32 0.0078125, %v404_v26 }
 0x153   :  { %v1119_v6 = vpop.eup %1118  ;;  %v946_v50 = vmul.f32 %v1904_v57, %v875_v40  ;;  %v878_v61 = vmul.f32 %v1220_v32, %v1117_v56  ;;  %1130 = vrsqrt.f32 %v755_v31  ;;  %v758_v48 = vadd.f32 1e-05, %v694_v20  ;;  %v1223_v31 = vld [vmem:[#allocation2 + $0xa0] sm:$0xff]  ;;  %v1225_v32 = vld [vmem:[#allocation2 + $0xb0] sm:$0xff] }
 0x154   :  { %1011 = vst [vmem:[#allocation5 + $0x88] sm:$0xff] %v947_v43  ;;  %v877_v41 = vmul.f32 %v1221_v18, %v1119_v6  ;;  %v757_v15 = vadd.f32 1e-05, %v693_v45  ;;  %v632_v39 = vsub.f32 %v504_v25, %v1870_v14  ;;  %v631_v51 = vsub.f32 %v503_v63, %v1872_v27  ;;  %v410_v37 = vpop.xlane.xlu1 %409  ;;  %v2162_v45 = vld [vmem:[#allocation23_spill] sm:$0xff] }
 0x155   :  { %v408_v5 = vpop.xlane.xlu0 %407  ;;  %1010 = vst [vmem:[#allocation5 + $0x80] sm:$0xff] %v946_v50  ;;  %v949_v28 = vmul.f32 %v1904_v57, %v878_v61  ;;  %1132 = vrsqrt.f32 %v758_v48  ;;  %v506_v22 = vmul.f32 0.0078125, %v410_v37  ;;  %v267_v14 = vmul.f32 0.0078125, %v2160_v17  ;;  %v1224_v63 = vld [vmem:[#allocation2 + $0xb8] sm:$0xff]  ;;  %v1226_v17 = vld [vmem:[#allocation2 + $0xc8] sm:$0xff] }
 0x156   :  { %v505_v23 = vmul.f32 0.0078125, %v408_v5  ;;  %v948_v1 = vmul.f32 %v1904_v57, %v877_v41  ;;  %1134 = vrsqrt.f32 %v757_v15  ;;  %v696_v47 = vmax.f32 %v632_v39, 0.0 }
 0x157   :  { %v695_v34 = vmax.f32 %v631_v51, 0.0  ;;  %v1121_v35 = vpop.eup %1120  ;;  %1013 = vst [vmem:[#allocation5 + $0x98] sm:$0xff] %v949_v28  ;;  %v634_v27 = vsub.f32 %v506_v22, %v1876_v58  ;;  %v270_v36 = vmul.f32 0.0078125, %v2161_v24  ;;  %v269_v58 = vmul.f32 0.0078125, %v2162_v45 }
 0x158   :  { %v633_v29 = vsub.f32 %v505_v23, %v1882_v46  ;;  %v1123_v19 = vpop.eup %1122  ;;  %1012 = vst [vmem:[#allocation5 + $0x90] sm:$0xff] %v948_v1  ;;  %v880_v59 = vmul.f32 %v1222_v52, %v1121_v35  ;;  %v760_v9 = vadd.f32 1e-05, %v696_v47  ;;  %v414_v12 = vpop.xlane.xlu1 %413  ;;  %v1995_v47 = vmul.f32 %v268_v55, %v268_v55 }
 0x159   :  { %v759_v16 = vadd.f32 1e-05, %v695_v34  ;;  %v412_v62 = vpop.xlane.xlu0 %411  ;;  %v879_v7 = vmul.f32 %v1223_v31, %v1123_v19  ;;  %v698_v26 = vmax.f32 %v634_v27, 0.0  ;;  %v508_v40 = vmul.f32 0.0078125, %v414_v12 }
 0x15a   :  { %v697_v3 = vmax.f32 %v633_v29, 0.0  ;;  %v1125_v20 = vpop.eup %1124  ;;  %v951_v46 = vmul.f32 %v1904_v57, %v880_v59  ;;  %1136 = vrsqrt.f32 %v760_v9  ;;  %v507_v25 = vmul.f32 0.0078125, %v412_v62  ;;  %v1227_v59 = vld [vmem:[#allocation2 + $0xc0] sm:$0xff] }
 0x15b   :  { %v1127_v56 = vpop.eup %1126  ;;  %v950_v43 = vmul.f32 %v1904_v57, %v879_v7  ;;  %v882_v6 = vmul.f32 %v1224_v63, %v1125_v20  ;;  %1138 = vrsqrt.f32 %v759_v16  ;;  %v762_v50 = vadd.f32 1e-05, %v698_v26  ;;  %v1228_v7 = vld [vmem:[#allocation2 + $0xd8] sm:$0xff] }
 0x15c   :  { %1015 = vst [vmem:[#allocation5 + $0xa8] sm:$0xff] %v951_v46  ;;  %v881_v61 = vmul.f32 %v1225_v32, %v1127_v56  ;;  %v761_v48 = vadd.f32 1e-05, %v697_v3  ;;  %v636_v18 = vsub.f32 %v508_v40, %v1886_v10  ;;  %v635_v41 = vsub.f32 %v507_v25, %v1889_v49  ;;  %v418_v15 = vpop.xlane.xlu1 %417  ;;  %v1229_v40 = vld [vmem:[#allocation2 + $0xd0] sm:$0xff] }
 0x15d   :  { %v416_v39 = vpop.xlane.xlu0 %415  ;;  %1014 = vst [vmem:[#allocation5 + $0xa0] sm:$0xff] %v950_v43  ;;  %v953_v51 = vmul.f32 %v1904_v57, %v882_v6  ;;  %1140 = vrsqrt.f32 %v762_v50  ;;  %v510_v37 = vmul.f32 0.0078125, %v418_v15  ;;  %v1997_v34 = vmul.f32 %v267_v14, %v267_v14  ;;  %v2164_v15 = vld [vmem:[#allocation11_spill] sm:$0xff] }
 0x15e   :  { %v509_v5 = vmul.f32 0.0078125, %v416_v39  ;;  %v952_v28 = vmul.f32 %v1904_v57, %v881_v61  ;;  %1142 = vrsqrt.f32 %v761_v48  ;;  %v700_v22 = vmax.f32 %v636_v18, 0.0  ;;  %v2163_v18 = vld [vmem:[#allocation10_spill] sm:$0xff] }
 0x15f   :  { %v699_v23 = vmax.f32 %v635_v41, 0.0  ;;  %v1129_v1 = vpop.eup %1128  ;;  %1017 = vst [vmem:[#allocation5 + $0xb8] sm:$0xff] %v953_v51  ;;  %v638_v10 = vsub.f32 %v510_v37, %v1892_v33  ;;  %v2001_v60 = vmul.f32 %v270_v36, %v270_v36  ;;  %v2003_v62 = vmul.f32 %v269_v58, %v269_v58  ;;  %v2165_v37 = vld [vmem:[#allocation12_spill] sm:$0xff] }
 0x160   :  { %v637_v49 = vsub.f32 %v509_v5, %v1894_v21  ;;  %v1131_v35 = vpop.eup %1130  ;;  %1016 = vst [vmem:[#allocation5 + $0xb0] sm:$0xff] %v952_v28  ;;  %v884_v27 = vmul.f32 %v1226_v17, %v1129_v1  ;;  %v764_v29 = vadd.f32 1e-05, %v700_v22  ;;  %v422_v24 = vpop.xlane.xlu1 %421  ;;  %v272_v41 = vmul.f32 0.0078125, %v2163_v18  ;;  %v1230_v28 = vld [vmem:[#allocation2 + $0xe8] sm:$0xff] }
 0x161   :  { %v763_v19 = vadd.f32 1e-05, %v699_v23  ;;  %v420_v52 = vpop.xlane.xlu0 %419  ;;  %v883_v55 = vmul.f32 %v1227_v59, %v1131_v35  ;;  %v702_v9 = vmax.f32 %v638_v10, 0.0  ;;  %v512_v16 = vmul.f32 0.0078125, %v422_v24  ;;  %v1231_v35 = vld [vmem:[#allocation2 + $0xe0] sm:$0xff] }
 0x162   :  { %v701_v14 = vmax.f32 %v637_v49, 0.0  ;;  %v1133_v12 = vpop.eup %1132  ;;  %v955_v33 = vmul.f32 %v1904_v57, %v884_v27  ;;  %1144 = vrsqrt.f32 %v764_v29  ;;  %v511_v21 = vmul.f32 0.0078125, %v420_v52  ;;  %v2166_v52 = vld [vmem:[#allocation13_spill] sm:$0xff] }
 0x163   :  { %v1135_v36 = vpop.eup %1134  ;;  %v954_v31 = vmul.f32 %v1904_v57, %v883_v55  ;;  %v886_v26 = vmul.f32 %v1228_v7, %v1133_v12  ;;  %1146 = vrsqrt.f32 %v763_v19  ;;  %v766_v3 = vadd.f32 1e-05, %v702_v9 }
 0x164   :  { %1019 = vst [vmem:[#allocation5 + $0xc8] sm:$0xff] %v955_v33  ;;  %v885_v20 = vmul.f32 %v1229_v40, %v1135_v36  ;;  %v765_v45 = vadd.f32 1e-05, %v701_v14  ;;  %v640_v46 = vsub.f32 %v512_v16, %v1898_v44  ;;  %v639_v58 = vsub.f32 %v511_v21, %v1909_v11  ;;  %v426_v25 = vpop.xlane.xlu1 %425  ;;  %v1232_v14 = vld [vmem:[#allocation2 + $0xf8] sm:$0xff]  ;;  %v1233_v33 = vld [vmem:[#allocation2 + $0xf0] sm:$0xff] }
 0x165   :  { %v424_v56 = vpop.xlane.xlu0 %423  ;;  %1018 = vst [vmem:[#allocation5 + $0xc0] sm:$0xff] %v954_v31  ;;  %v957_v43 = vmul.f32 %v1904_v57, %v886_v26  ;;  %1148 = vrsqrt.f32 %v766_v3  ;;  %v514_v63 = vmul.f32 0.0078125, %v426_v25  ;;  %v271_v44 = vmul.f32 0.0078125, %v2164_v15 }
 0x166   :  { %v513_v6 = vmul.f32 0.0078125, %v424_v56  ;;  %v956_v50 = vmul.f32 %v1904_v57, %v885_v20  ;;  %1150 = vrsqrt.f32 %v765_v45  ;;  %v704_v32 = vmax.f32 %v640_v46, 0.0 }
 0x167   :  { %v703_v61 = vmax.f32 %v639_v58, 0.0  ;;  %v1137_v48 = vpop.eup %1136  ;;  %1021 = vst [vmem:[#allocation5 + $0xd8] sm:$0xff] %v957_v43  ;;  %v642_v11 = vsub.f32 %v514_v63, %v1915_v2  ;;  %v274_v5 = vmul.f32 0.0078125, %v2165_v37  ;;  %v273_v2 = vmul.f32 0.0078125, %v2166_v52 }
 0x168   :  { %v641_v39 = vsub.f32 %v513_v6, %v1924_v30  ;;  %v1139_v51 = vpop.eup %1138  ;;  %1020 = vst [vmem:[#allocation5 + $0xd0] sm:$0xff] %v956_v50  ;;  %v888_v22 = vmul.f32 %v1230_v28, %v1137_v48  ;;  %v768_v23 = vadd.f32 1e-05, %v704_v32  ;;  %v430_v10 = vpop.xlane.xlu1 %429  ;;  %v2023_v43 = vmul.f32 %v272_v41, %v272_v41  ;;  %v1234_v32 = vld [vmem:[#allocation2 + $0x108] sm:$0xff] }
 0x169   :  { %v767_v1 = vadd.f32 1e-05, %v703_v61  ;;  %v428_v49 = vpop.xlane.xlu0 %427  ;;  %v887_v17 = vmul.f32 %v1231_v35, %v1139_v51  ;;  %v706_v27 = vmax.f32 %v642_v11, 0.0  ;;  %v516_v19 = vmul.f32 0.0078125, %v430_v10  ;;  %v1237_v35 = vld [vmem:[#allocation2 + $0x110] sm:$0xff] }
 0x16a   :  { %v705_v29 = vmax.f32 %v641_v39, 0.0  ;;  %v1141_v24 = vpop.eup %1140  ;;  %v959_v30 = vmul.f32 %v1904_v57, %v888_v22  ;;  %1152 = vrsqrt.f32 %v768_v23  ;;  %v515_v59 = vmul.f32 0.0078125, %v428_v49  ;;  %v1235_v39 = vld [vmem:[#allocation2 + $0x100] sm:$0xff] }
 0x16b   :  { %v1143_v55 = vpop.eup %1142  ;;  %v958_v9 = vmul.f32 %v1904_v57, %v887_v17  ;;  %v890_v16 = vmul.f32 %v1232_v14, %v1141_v24  ;;  %1154 = vrsqrt.f32 %v767_v1  ;;  %v770_v12 = vadd.f32 1e-05, %v706_v27  ;;  %v1236_v1 = vld [vmem:[#allocation2 + $0x118] sm:$0xff] }
 0x16c   :  { %1023 = vst [vmem:[#allocation5 + $0xe8] sm:$0xff] %v959_v30  ;;  %v889_v21 = vmul.f32 %v1233_v33, %v1143_v55  ;;  %v769_v36 = vadd.f32 1e-05, %v705_v29  ;;  %v644_v31 = vsub.f32 %v516_v19, %v1932_v4  ;;  %v643_v7 = vsub.f32 %v515_v59, %v1940_v42  ;;  %v434_v26 = vpop.xlane.xlu1 %433 }
 0x16d   :  { %v432_v3 = vpop.xlane.xlu0 %431  ;;  %1022 = vst [vmem:[#allocation5 + $0xe0] sm:$0xff] %v958_v9  ;;  %v961_v40 = vmul.f32 %v1904_v57, %v890_v16  ;;  %1156 = vrsqrt.f32 %v770_v12  ;;  %v518_v20 = vmul.f32 0.0078125, %v434_v26  ;;  %v2025_v63 = vmul.f32 %v271_v44, %v271_v44  ;;  %v2167_v12 = vld [vmem:[#allocation14_spill] sm:$0xff] }
 0x16e   :  { %v517_v45 = vmul.f32 0.0078125, %v432_v3  ;;  %v960_v46 = vmul.f32 %v1904_v57, %v889_v21  ;;  %1158 = vrsqrt.f32 %v769_v36  ;;  %v708_v58 = vmax.f32 %v644_v31, 0.0  ;;  %v2168_v21 = vld [vmem:[#allocation15_spill] sm:$0xff]  ;;  %v1238_v3 = vld [vmem:[#allocation2 + $0x128] sm:$0xff] }
 0x16f   :  { %v707_v25 = vmax.f32 %v643_v7, 0.0  ;;  %v1145_v56 = vpop.eup %1144  ;;  %1025 = vst [vmem:[#allocation5 + $0xf8] sm:$0xff] %v961_v40  ;;  %v646_v4 = vsub.f32 %v518_v20, %v1946_v53  ;;  %v2029_v50 = vmul.f32 %v274_v5, %v274_v5  ;;  %v2031_v22 = vmul.f32 %v273_v2, %v273_v2  ;;  %v2169_v7 = vld [vmem:[#allocation24_spill] sm:$0xff] }
 0x170   :  { %v645_v42 = vsub.f32 %v517_v45, %v1949_v13  ;;  %v1147_v6 = vpop.eup %1146  ;;  %1024 = vst [vmem:[#allocation5 + $0xf0] sm:$0xff] %v960_v46  ;;  %v892_v61 = vmul.f32 %v1234_v32, %v1145_v56  ;;  %v772_v48 = vadd.f32 1e-05, %v708_v58  ;;  %v438_v15 = vpop.xlane.xlu1 %437  ;;  %v276_v33 = vmul.f32 0.0078125, %v2167_v12 }
 0x171   :  { %v771_v18 = vadd.f32 1e-05, %v707_v25  ;;  %v436_v11 = vpop.xlane.xlu0 %435  ;;  %v891_v41 = vmul.f32 %v1235_v39, %v1147_v6  ;;  %v710_v51 = vmax.f32 %v646_v4, 0.0  ;;  %v520_v37 = vmul.f32 0.0078125, %v438_v15  ;;  %v1239_v25 = vld [vmem:[#allocation2 + $0x120] sm:$0xff] }
 0x172   :  { %v709_v44 = vmax.f32 %v645_v42, 0.0  ;;  %v1149_v28 = vpop.eup %1148  ;;  %v963_v53 = vmul.f32 %v1904_v57, %v892_v61  ;;  %1160 = vrsqrt.f32 %v772_v48  ;;  %v519_v13 = vmul.f32 0.0078125, %v436_v11  ;;  %v2170_v61 = vld [vmem:[#allocation25_spill] sm:$0xff]  ;;  %v1240_v11 = vld [vmem:[#allocation2 + $0x138] sm:$0xff] }
 0x173   :  { %v1151_v5 = vpop.eup %1150  ;;  %v962_v23 = vmul.f32 %v1904_v57, %v891_v41  ;;  %v894_v10 = vmul.f32 %v1236_v1, %v1149_v28  ;;  %1162 = vrsqrt.f32 %v771_v18  ;;  %v774_v49 = vadd.f32 1e-05, %v710_v51  ;;  %v1241_v51 = vld [vmem:[#allocation2 + $0x130] sm:$0xff] }
 0x174   :  { %1027 = vst [vmem:[#allocation5 + $0x108] sm:$0xff] %v963_v53  ;;  %v893_v17 = vmul.f32 %v1237_v35, %v1151_v5  ;;  %v773_v27 = vadd.f32 1e-05, %v709_v44  ;;  %v648_v29 = vsub.f32 %v520_v37, %v1967_v38  ;;  %v647_v19 = vsub.f32 %v519_v13, %v1969_v8  ;;  %v442_v24 = vpop.xlane.xlu1 %441 }
 0x175   :  { %v440_v52 = vpop.xlane.xlu0 %439  ;;  %1026 = vst [vmem:[#allocation5 + $0x100] sm:$0xff] %v962_v23  ;;  %v965_v2 = vmul.f32 %v1904_v57, %v894_v10  ;;  %1164 = vrsqrt.f32 %v774_v49  ;;  %v522_v30 = vmul.f32 0.0078125, %v442_v24  ;;  %v275_v38 = vmul.f32 0.0078125, %v2168_v21 }
 0x176   :  { %v521_v59 = vmul.f32 0.0078125, %v440_v52  ;;  %v964_v55 = vmul.f32 %v1904_v57, %v893_v17  ;;  %1166 = vrsqrt.f32 %v773_v27  ;;  %v712_v9 = vmax.f32 %v648_v29, 0.0 }
 0x177   :  { %v711_v14 = vmax.f32 %v647_v19, 0.0  ;;  %v1153_v16 = vpop.eup %1152  ;;  %1029 = vst [vmem:[#allocation5 + $0x118] sm:$0xff] %v965_v2  ;;  %v650_v8 = vsub.f32 %v522_v30, %v1973_v0  ;;  %v278_v26 = vmul.f32 0.0078125, %v2169_v7  ;;  %v277_v0 = vmul.f32 0.0078125, %v2170_v61  ;;  %v1242_v2 = vld [vmem:[#allocation2 + $0x148] sm:$0xff] }
 0x178   :  { %v649_v36 = vsub.f32 %v521_v59, %v1975_v54  ;;  %v1155_v31 = vpop.eup %1154  ;;  %1028 = vst [vmem:[#allocation5 + $0x110] sm:$0xff] %v964_v55  ;;  %v896_v40 = vmul.f32 %v1238_v3, %v1153_v16  ;;  %v776_v20 = vadd.f32 1e-05, %v712_v9  ;;  %v446_v46 = vpop.xlane.xlu1 %445  ;;  %v2051_v29 = vmul.f32 %v276_v33, %v276_v33  ;;  %v1243_v16 = vld [vmem:[#allocation2 + $0x140] sm:$0xff] }
 0x179   :  { %v775_v45 = vadd.f32 1e-05, %v711_v14  ;;  %v444_v58 = vpop.xlane.xlu0 %443  ;;  %v895_v56 = vmul.f32 %v1239_v25, %v1155_v31  ;;  %v714_v4 = vmax.f32 %v650_v8, 0.0  ;;  %v524_v6 = vmul.f32 0.0078125, %v446_v46 }
 0x17a   :  { %v713_v42 = vmax.f32 %v649_v36, 0.0  ;;  %v1157_v32 = vpop.eup %1156  ;;  %v967_v54 = vmul.f32 %v1904_v57, %v896_v40  ;;  %1168 = vrsqrt.f32 %v776_v20  ;;  %v523_v48 = vmul.f32 0.0078125, %v444_v58  ;;  %v1245_v20 = vld [vmem:[#allocation2 + $0x150] sm:$0xff] }
 0x17b   :  { %v1159_v18 = vpop.eup %1158  ;;  %v966_v15 = vmul.f32 %v1904_v57, %v895_v56  ;;  %v898_v39 = vmul.f32 %v1240_v11, %v1157_v32  ;;  %1170 = vrsqrt.f32 %v775_v45  ;;  %v778_v41 = vadd.f32 1e-05, %v714_v4  ;;  %v2172_v11 = vld [vmem:[#allocation27_spill] sm:$0xff] }
 0x17c   :  { %1031 = vst [vmem:[#allocation5 + $0x128] sm:$0xff] %v967_v54  ;;  %v897_v44 = vmul.f32 %v1241_v51, %v1159_v18  ;;  %v777_v37 = vadd.f32 1e-05, %v713_v42  ;;  %v652_v28 = vsub.f32 %v524_v6, %v1995_v47  ;;  %v651_v53 = vsub.f32 %v523_v48, %v1997_v34  ;;  %v450_v13 = vpop.xlane.xlu1 %449  ;;  %v2171_v18 = vld [vmem:[#allocation26_spill] sm:$0xff]  ;;  %v2173_v51 = vld [vmem:[#allocation28_spill] sm:$0xff] }
 0x17d   :  { %v448_v5 = vpop.xlane.xlu0 %447  ;;  %1030 = vst [vmem:[#allocation5 + $0x120] sm:$0xff] %v966_v15  ;;  %v969_v23 = vmul.f32 %v1904_v57, %v898_v39  ;;  %1172 = vrsqrt.f32 %v778_v41  ;;  %v526_v1 = vmul.f32 0.0078125, %v450_v13  ;;  %v2053_v19 = vmul.f32 %v275_v38, %v275_v38 }
 0x17e   :  { %v525_v10 = vmul.f32 0.0078125, %v448_v5  ;;  %v968_v49 = vmul.f32 %v1904_v57, %v897_v44  ;;  %1174 = vrsqrt.f32 %v777_v37  ;;  %v716_v35 = vmax.f32 %v652_v28, 0.0  ;;  %v1246_v37 = vld [vmem:[#allocation2 + $0x168] sm:$0xff] }
 0x17f   :  { %v715_v17 = vmax.f32 %v651_v53, 0.0  ;;  %v1161_v27 = vpop.eup %1160  ;;  %1033 = vst [vmem:[#allocation5 + $0x138] sm:$0xff] %v969_v23  ;;  %v654_v47 = vsub.f32 %v526_v1, %v2001_v60  ;;  %v2057_v52 = vmul.f32 %v278_v26, %v278_v26  ;;  %v2059_v36 = vmul.f32 %v277_v0, %v277_v0  ;;  %v1244_v26 = vld [vmem:[#allocation2 + $0x158] sm:$0xff]  ;;  %v1247_v1 = vld [vmem:[#allocation2 + $0x160] sm:$0xff] }
 0x180   :  { %v653_v34 = vsub.f32 %v525_v10, %v2003_v62  ;;  %v1163_v24 = vpop.eup %1162  ;;  %1032 = vst [vmem:[#allocation5 + $0x130] sm:$0xff] %v968_v49  ;;  %v900_v30 = vmul.f32 %v1242_v2, %v1161_v27  ;;  %v780_v59 = vadd.f32 1e-05, %v716_v35  ;;  %v454_v9 = vpop.xlane.xlu1 %453  ;;  %v280_v15 = vmul.f32 0.0078125, %v2171_v18 }
 0x181   :  { %v779_v55 = vadd.f32 1e-05, %v715_v17  ;;  %v452_v14 = vpop.xlane.xlu0 %451  ;;  %v899_v12 = vmul.f32 %v1243_v16, %v1163_v24  ;;  %v718_v33 = vmax.f32 %v654_v47, 0.0  ;;  %v528_v38 = vmul.f32 0.0078125, %v454_v9  ;;  %v2174_v47 = vld [vmem:[#allocation29_spill] sm:$0xff]  ;;  %v1249_v9 = vld [vmem:[#allocation2 + $0x170] sm:$0xff] }
 0x182   :  { %v717_v21 = vmax.f32 %v653_v34, 0.0  ;;  %v1165_v8 = vpop.eup %1164  ;;  %v971_v60 = vmul.f32 %v1904_v57, %v900_v30  ;;  %1176 = vrsqrt.f32 %v780_v59  ;;  %v527_v62 = vmul.f32 0.0078125, %v452_v14  ;;  %v1248_v30 = vld [vmem:[#allocation2 + $0x178] sm:$0xff] }
 0x183   :  { %v1167_v31 = vpop.eup %1166  ;;  %v970_v7 = vmul.f32 %v1904_v57, %v899_v12  ;;  %v902_v3 = vmul.f32 %v1244_v26, %v1165_v8  ;;  %1178 = vrsqrt.f32 %v779_v55  ;;  %v782_v40 = vadd.f32 1e-05, %v718_v33  ;;  %v2080_v8 = vld [vmem:[%s2109_s1] ss:$0 sm:$0xff]  ;;  %s1314_s1 = smov [#allocation5]  }
 0x184   :  { %1035 = vst [vmem:[#allocation5 + $0x148] sm:$0xff] %v971_v60  ;;  %v901_v45 = vmul.f32 %v1245_v20, %v1167_v31  ;;  %v781_v46 = vadd.f32 1e-05, %v717_v21  ;;  %v656_v58 = vsub.f32 %v528_v38, %v2023_v43  ;;  %v655_v25 = vsub.f32 %v527_v62, %v2025_v63  ;;  %v458_v56 = vpop.xlane.xlu1 %457  ;;  %s1063_s19 = sshll.u32 %s1314_s1, 4  ;;  %s1064_s19 = int_to_ptr.vmem [resolvable:$true] %s1063_s19 }
 0x185   :  { %v456_v4 = vpop.xlane.xlu0 %455  ;;  %1034 = vst [vmem:[#allocation5 + $0x140] sm:$0xff] %v970_v7  ;;  %v973_v42 = vmul.f32 %v1904_v57, %v902_v3  ;;  %1180 = vrsqrt.f32 %v782_v40  ;;  %v530_v6 = vmul.f32 0.0078125, %v458_v56  ;;  %v279_v43 = vmul.f32 0.0078125, %v2172_v11  ;;  %s1287_s20 = scalar_lea.vmem %s1064_s19, 8192  ;;  %p1292_p6 = scmp.lt.s32.totalorder %s1064_s19, %s1064_s19 }
 0x186   :  { %v529_v32 = vmul.f32 0.0078125, %v456_v4  ;;  %v972_v61 = vmul.f32 %v1904_v57, %v901_v45  ;;  %1182 = vrsqrt.f32 %v781_v46  ;;  %v720_v0 = vmax.f32 %v656_v58, 0.0  ;;  %v1251_v58 = vld [vmem:[#allocation2 + $0x188] sm:$0xff]  ;;  %p1288_p5 = scmp.ne.s32.totalorder %s1064_s19, %s1287_s20  ;;  %p1293_p7 = scmp.lt.s32.totalorder %s1287_s20, %s1287_s20 }
 0x187   :  { %v719_v54 = vmax.f32 %v655_v25, 0.0  ;;  %v1169_v48 = vpop.eup %1168  ;;  %1037 = vst [vmem:[#allocation5 + $0x158] sm:$0xff] %v973_v42  ;;  %v658_v63 = vsub.f32 %v530_v6, %v2029_v50  ;;  %v282_v44 = vmul.f32 0.0078125, %v2173_v51  ;;  %v281_v50 = vmul.f32 0.0078125, %v2174_v47  ;;  %v1254_v51 = vld [vmem:[#allocation2 + $0x190] sm:$0xff] }
 0x188   :  { %v657_v39 = vsub.f32 %v529_v32, %v2031_v22  ;;  %v1171_v41 = vpop.eup %1170  ;;  %1036 = vst [vmem:[#allocation5 + $0x150] sm:$0xff] %v972_v61  ;;  %v904_v28 = vmul.f32 %v1246_v37, %v1169_v48  ;;  %v784_v53 = vadd.f32 1e-05, %v720_v0  ;;  %v462_v5 = vpop.xlane.xlu1 %461  ;;  %v599_v3 = vmul.f32 %v279_v43, %v279_v43  ;;  %v1252_v32 = vld [vmem:[#allocation2 + $0x180] sm:$0xff]  ;;  %p1294_p8 = por %p1293_p7, %p1292_p6 }
 0x189   :  { %v783_v13 = vadd.f32 1e-05, %v719_v54  ;;  %v460_v23 = vpop.xlane.xlu0 %459  ;;  %v903_v10 = vmul.f32 %v1247_v1, %v1171_v41  ;;  %v722_v49 = vmax.f32 %v658_v63, 0.0  ;;  %v532_v17 = vmul.f32 0.0078125, %v462_v5  ;;  %v1253_v63 = vld [vmem:[#allocation2 + $0x198] sm:$0xff] }
 0x18a   :  { %v721_v35 = vmax.f32 %v657_v39, 0.0  ;;  %v1173_v27 = vpop.eup %1172  ;;  %v975_v22 = vmul.f32 %v1904_v57, %v904_v28  ;;  %1184 = vrsqrt.f32 %v784_v53  ;;  %v531_v34 = vmul.f32 0.0078125, %v460_v23  ;;  %p1295_p9 = pnand %p1294_p8, %p1288_p5 }
 0x18b   :  { %v1175_v24 = vpop.eup %1174  ;;  %v974_v2 = vmul.f32 %v1904_v57, %v903_v10  ;;  %v906_v59 = vmul.f32 %v1248_v30, %v1173_v27  ;;  %1186 = vrsqrt.f32 %v783_v13  ;;  %v786_v55 = vadd.f32 1e-05, %v722_v49 }
 0x18c   :  { %1039 = vst [vmem:[#allocation5 + $0x168] sm:$0xff] %v975_v22  ;;  %v905_v14 = vmul.f32 %v1249_v9, %v1175_v24  ;;  %v785_v16 = vadd.f32 1e-05, %v721_v35  ;;  %v660_v12 = vsub.f32 %v532_v17, %v2051_v29  ;;  %v659_v33 = vsub.f32 %v531_v34, %v2053_v19  ;;  %v466_v21 = vpop.xlane.xlu1 %465  ;;  %v1255_v34 = vld [vmem:[#allocation2 + $0x1a8] sm:$0xff] }
 0x18d   :  { %v464_v38 = vpop.xlane.xlu0 %463  ;;  %1038 = vst [vmem:[#allocation5 + $0x160] sm:$0xff] %v974_v2  ;;  %v977_v57 = vmul.f32 %v2080_v8, %v906_v59  ;;  %1188 = vrsqrt.f32 %v786_v55  ;;  %v534_v60 = vmul.f32 0.0078125, %v466_v21  ;;  %v600_v19 = vmul.f32 %v280_v15, %v280_v15  ;;  %v1256_v59 = vld [vmem:[#allocation2 + $0x1a0] sm:$0xff] }
 0x18e   :  { %v533_v62 = vmul.f32 0.0078125, %v464_v38  ;;  %v976_v31 = vmul.f32 %v2080_v8, %v905_v14  ;;  %1190 = vrsqrt.f32 %v785_v16  ;;  %v724_v7 = vmax.f32 %v660_v12, 0.0  ;;  %v1257_v38 = vld [vmem:[#allocation2 + $0x1b8] sm:$0xff] }
 0x18f   :  { %v723_v29 = vmax.f32 %v659_v33, 0.0  ;;  %v1177_v26 = vpop.eup %1176  ;;  %1041 = vst [vmem:[#allocation5 + $0x178] sm:$0xff] %v977_v57  ;;  %v662_v40 = vsub.f32 %v534_v60, %v2057_v52  ;;  %v602_v46 = vmul.f32 %v282_v44, %v282_v44  ;;  %v601_v15 = vmul.f32 %v281_v50, %v281_v50 }
 0x190   :  { %v661_v20 = vsub.f32 %v533_v62, %v2059_v36  ;;  %v1179_v45 = vpop.eup %1178  ;;  %1040 = vst [vmem:[#allocation5 + $0x170] sm:$0xff] %v976_v31  ;;  %v908_v25 = vmul.f32 %v1251_v58, %v1177_v26  ;;  %v788_v56 = vadd.f32 1e-05, %v724_v7  ;;  %v470_v42 = vpop.xlane.xlu1 %469  ;;  %v1258_v62 = vld [vmem:[#allocation2 + $0x1b0] sm:$0xff] }
 0x191   :  { %v787_v4 = vadd.f32 1e-05, %v723_v29  ;;  %v468_v6 = vpop.xlane.xlu0 %467  ;;  %v907_v61 = vmul.f32 %v1252_v32, %v1179_v45  ;;  %v726_v0 = vmax.f32 %v662_v40, 0.0  ;;  %v536_v48 = vmul.f32 0.0078125, %v470_v42  ;;  %v1259_v40 = vld [vmem:[#allocation2 + $0x1c8] sm:$0xff]  ;;  %v1260_v45 = vld [vmem:[#allocation2 + $0x1c0] sm:$0xff] }
 0x192   :  { %v725_v54 = vmax.f32 %v661_v20, 0.0  ;;  %v1181_v18 = vpop.eup %1180  ;;  %v979_v52 = vmul.f32 %v2080_v8, %v908_v25  ;;  %1192 = vrsqrt.f32 %v788_v56  ;;  %v535_v36 = vmul.f32 0.0078125, %v468_v6  ;;  %v1261_v42 = vld [vmem:[#allocation2 + $0x1d8] sm:$0xff]  ;;  %v1262_v32 = vld [vmem:[#allocation2 + $0x1d0] sm:$0xff] }
 0x193   :  { %v1183_v11 = vpop.eup %1182  ;;  %v978_v43 = vmul.f32 %v2080_v8, %v907_v61  ;;  %v910_v39 = vmul.f32 %v1253_v63, %v1181_v18  ;;  %1194 = vrsqrt.f32 %v787_v4  ;;  %v790_v41 = vadd.f32 1e-05, %v726_v0 }
 0x194   :  { %1043 = vst [vmem:[#allocation5 + $0x188] sm:$0xff] %v979_v52  ;;  %v909_v44 = vmul.f32 %v1254_v51, %v1183_v11  ;;  %v789_v37 = vadd.f32 1e-05, %v725_v54  ;;  %v664_v28 = vsub.f32 %v536_v48, %v600_v19  ;;  %v663_v53 = vsub.f32 %v535_v36, %v599_v3  ;;  %v474_v13 = vpop.xlane.xlu1 %473  ;;  %v1264_v36 = vld [vmem:[#allocation2 + $0x1e0] sm:$0xff]  ;;  %v1265_v51 = vld [vmem:[#allocation2 + $0x1f8] sm:$0xff] }
 0x195   :  { %v472_v5 = vpop.xlane.xlu0 %471  ;;  %1042 = vst [vmem:[#allocation5 + $0x180] sm:$0xff] %v978_v43  ;;  %v981_v23 = vmul.f32 %v2080_v8, %v910_v39  ;;  %1196 = vrsqrt.f32 %v790_v41  ;;  %v538_v1 = vmul.f32 0.0078125, %v474_v13 }
 0x196   :  { %v537_v10 = vmul.f32 0.0078125, %v472_v5  ;;  %v980_v49 = vmul.f32 %v2080_v8, %v909_v44  ;;  %1198 = vrsqrt.f32 %v789_v37  ;;  %v728_v35 = vmax.f32 %v664_v28, 0.0  ;;  %v1266_v37 = vld [vmem:[#allocation2 + $0x1f0] sm:$0xff] }
 0x197   :  { %v727_v17 = vmax.f32 %v663_v53, 0.0  ;;  %v1185_v27 = vpop.eup %1184  ;;  %1045 = vst [vmem:[#allocation5 + $0x198] sm:$0xff] %v981_v23  ;;  %v666_v47 = vsub.f32 %v538_v1, %v602_v46 }
 0x198   :  { %v665_v50 = vsub.f32 %v537_v10, %v601_v15  ;;  %v1187_v22 = vpop.eup %1186  ;;  %1044 = vst [vmem:[#allocation5 + $0x190] sm:$0xff] %v980_v49  ;;  %v912_v24 = vmul.f32 %v1255_v34, %v1185_v27  ;;  %v792_v2 = vadd.f32 1e-05, %v728_v35  ;;  %v1263_v15 = vld [vmem:[#allocation2 + $0x1e8] sm:$0xff] }
 0x199   :  { %v791_v30 = vadd.f32 1e-05, %v727_v17  ;;  %v911_v55 = vmul.f32 %v1256_v59, %v1187_v22  ;;  %v730_v9 = vmax.f32 %v666_v47, 0.0 }
 0x19a   :  { %v729_v14 = vmax.f32 %v665_v50, 0.0  ;;  %v1189_v16 = vpop.eup %1188  ;;  %v983_v12 = vmul.f32 %v2080_v8, %v912_v24  ;;  %1200 = vrsqrt.f32 %v792_v2 }
 0x19b   :  { %v1191_v33 = vpop.eup %1190  ;;  %v982_v21 = vmul.f32 %v2080_v8, %v911_v55  ;;  %v914_v57 = vmul.f32 %v1257_v38, %v1189_v16  ;;  %1202 = vrsqrt.f32 %v791_v30  ;;  %v794_v60 = vadd.f32 1e-05, %v730_v9 }
 0x19c   :  { %1047 = vst [vmem:[#allocation5 + $0x1a8] sm:$0xff] %v983_v12  ;;  %v913_v31 = vmul.f32 %v1258_v62, %v1191_v33  ;;  %v793_v7 = vadd.f32 1e-05, %v729_v14 }
 0x19d   :  { %1046 = vst [vmem:[#allocation5 + $0x1a0] sm:$0xff] %v982_v21  ;;  %v985_v29 = vmul.f32 %v2080_v8, %v914_v57  ;;  %1204 = vrsqrt.f32 %v794_v60 }
 0x19e   :  { %v984_v26 = vmul.f32 %v2080_v8, %v913_v31  ;;  %1206 = vrsqrt.f32 %v793_v7 }
 0x19f   :  { %v1193_v19 = vpop.eup %1192  ;;  %1049 = vst [vmem:[#allocation5 + $0x1b8] sm:$0xff] %v985_v29 }
 0x1a0   :  { %v1195_v3 = vpop.eup %1194  ;;  %1048 = vst [vmem:[#allocation5 + $0x1b0] sm:$0xff] %v984_v26  ;;  %v916_v20 = vmul.f32 %v1259_v40, %v1193_v19 }
 0x1a1   :  { %v915_v46 = vmul.f32 %v1260_v45, %v1195_v3 }
 0x1a2   :  { %v1197_v58 = vpop.eup %1196  ;;  %v987_v25 = vmul.f32 %v2080_v8, %v916_v20 }
 0x1a3   :  { %v1199_v56 = vpop.eup %1198  ;;  %v986_v4 = vmul.f32 %v2080_v8, %v915_v46  ;;  %v918_v6 = vmul.f32 %v1261_v42, %v1197_v58 }
 0x1a4   :  { %1051 = vst [vmem:[#allocation5 + $0x1c8] sm:$0xff] %v987_v25  ;;  %v917_v61 = vmul.f32 %v1262_v32, %v1199_v56 }
 0x1a5   :  { %1050 = vst [vmem:[#allocation5 + $0x1c0] sm:$0xff] %v986_v4  ;;  %v989_v0 = vmul.f32 %v2080_v8, %v918_v6 }
 0x1a6   :  { %v988_v54 = vmul.f32 %v2080_v8, %v917_v61 }
 0x1a7   :  { %v1201_v48 = vpop.eup %1200  ;;  %1053 = vst [vmem:[#allocation5 + $0x1d8] sm:$0xff] %v989_v0 }
 0x1a8   :  { %v1203_v18 = vpop.eup %1202  ;;  %1052 = vst [vmem:[#allocation5 + $0x1d0] sm:$0xff] %v988_v54  ;;  %v920_v52 = vmul.f32 %v1263_v15, %v1201_v48 }
 0x1a9   :  { %v919_v11 = vmul.f32 %v1264_v36, %v1203_v18 }
 0x1aa   :  { %v1205_v43 = vpop.eup %1204  ;;  %v991_v63 = vmul.f32 %v2080_v8, %v920_v52 }
 0x1ab   :  { %v1207_v39 = vpop.eup %1206  ;;  %v990_v41 = vmul.f32 %v2080_v8, %v919_v11  ;;  %v922_v44 = vmul.f32 %v1265_v51, %v1205_v43 }
 0x1ac   :  { %1055 = vst [vmem:[#allocation5 + $0x1e8] sm:$0xff] %v991_v63  ;;  %v921_v28 = vmul.f32 %v1266_v37, %v1207_v39 }
 0x1ad   :  { %1054 = vst [vmem:[#allocation5 + $0x1e0] sm:$0xff] %v990_v41  ;;  %v993_v53 = vmul.f32 %v2080_v8, %v922_v44 }
 0x1ae   :  { %v992_v13 = vmul.f32 %v2080_v8, %v921_v28 }
 0x1af   :  { %1057 = vst [vmem:[#allocation5 + $0x1f8] sm:$0xff] %v993_v53 }
 0x1b0   :  { %1056 = vst [vmem:[#allocation5 + $0x1f0] sm:$0xff] %v992_v13 }
 0x1b1   :  { %1298 = shalt.err (!%p1295_p9)
}
 0x1b2   :  { %1069 = dma.vmem_to_hbm [thread:$0]  %s1064_s19, 8192, %s2110_s2, [#allocation4], %s1312_s12, %s1312_s12, %s1313_s13  }
 0x1b3   :  { %1309 = dma.done.wait [#allocation4], 8192  }
 0x1b4   :  { %1310 = vsyncadd [#allocation4], 4294959104 }
 0x1b5   :  { %1073 = vsyncpa [#allocation3], 1 }
 0x1b6   :  { %1074 = vsyncpa [#allocation4], 1 }

</bundles_post_ra>
